<compile_context>
chip_gen: v7x
topology: tpu7x:2x2x1
jax: 0.10.0
libtpu: 0.0.40
codegen_flags: <defaults>
</compile_context>

<pallas_src>
import functools
import math

import jax
import jax.numpy as jnp
from jax.experimental import pallas as pl
from jax.experimental.pallas import tpu as pltpu


# ----------------------------------------------------------------------------
# Parameter setup (deterministic, mirrors AxialRoPE.__init__ / setup_freqs)
# ----------------------------------------------------------------------------
def setup_freqs(dim: int, max_harmonics: int) -> jnp.ndarray:
    # torch.linspace(log(1), log(max_harmonics), dim).exp().round()
    return jnp.round(jnp.exp(jnp.linspace(0.0, math.log(max_harmonics), dim)))


def make_axial_rope_freqs(dim: int, num_heads: int, max_harmonics):
    fh = setup_freqs(num_heads * dim // 4, max_harmonics[0])
    fw = setup_freqs(num_heads * dim // 4, max_harmonics[1])
    # .view(dim // 4, num_heads).T  ->  (num_heads, dim // 4)
    freqs_h = fh.reshape(dim // 4, num_heads).T
    freqs_w = fw.reshape(dim // 4, num_heads).T
    return freqs_h.astype(jnp.float32), freqs_w.astype(jnp.float32)


# ----------------------------------------------------------------------------
# Pallas kernel
#   coords_ref : (tm, 2*pack)  packed coordinates, lanes [h0,w0,h1,w1,...]
#   f_ref      : (2, d_out)    row 0: [fh_n | 0] per head, row 1: [0 | fw_n]
#   out_ref    : (tm, pack*d_out) lane-packed radians
# Per packed slot p:  out[:, p*d_out:(p+1)*d_out] = h_p*fh_row + w_p*fw_row
# Exactly 2 VPU multiplies + 1 add per output element, exact f32.
# ----------------------------------------------------------------------------
def _axial_rope_kernel(coords_ref, f_ref, out_ref, *, pack, d_out):
    c = coords_ref[...]                    # (tm, 2*pack) f32
    fh = f_ref[0:1, :]                     # (1, d_out)
    fw = f_ref[1:2, :]                     # (1, d_out)
    for p in range(pack):                  # unrolled at trace time (pack <= 128)
        h = c[:, 2 * p:2 * p + 1]          # (tm, 1)
        w = c[:, 2 * p + 1:2 * p + 2]      # (tm, 1)
        blk = h * fh + w * fw              # exact: the "other" freq row is 0
        out_ref[:, p * d_out:(p + 1) * d_out] = blk.astype(out_ref.dtype)


# ----------------------------------------------------------------------------
# Host-side tiling heuristics
# ----------------------------------------------------------------------------
def _choose_packing(m, d_out, total_out_bytes, target_tile_bytes):
    """Pick how many (b,h,w) rows to fold into the lane dimension.

    Prefer 2*pack == 128 (dense coords DMA / VMEM) and a row count that tiles
    in multiples of 8 (avoids the padded fallback)."""
    fits_single = total_out_bytes <= target_tile_bytes
    candidates = [p for p in (64, 128, 32, 16, 8, 4, 2)
                  if m % p == 0 and (p * d_out) % 128 == 0]
    for p in candidates:
        if (m // p) % 8 == 0 or fits_single:
            return p
    if candidates:
        return candidates[0]
    return 1   # sub-128-lane (masked) stores; correct but slower, rare


def _pick_row_tile(rows, row_bytes, target_tile_bytes):
    """Return (tm, rows_pad).  tm divides rows_pad; rows_pad == rows unless the
    rare ragged fallback triggers."""
    target_rows = max(8, target_tile_bytes // max(row_bytes, 1))
    if rows <= target_rows:
        # Whole problem fits one tile.  Split in two when cheap so a v7x
        # megacore ('parallel' grid axis) can use both TensorCores.
        if rows >= 16 and rows % 16 == 0:
            return rows // 2, rows
        return rows, rows
    start = (min(target_rows, rows) // 8) * 8
    for d in range(start, 7, -8):          # tiny host-side loop
        if rows % d == 0:
            return d, rows
    # No aligned exact divisor (rows % 8 != 0 and rows > target): pad.
    # TODO(synk): the padded path needs a post-kernel slice; pl.BoundedSlice
    # could handle the ragged tail in-kernel if this ever matters.
    tm = max(8, start)
    rows_pad = pl.cdiv(rows, tm) * tm
    return tm, rows_pad


# ----------------------------------------------------------------------------
# Forward wrapper
# ----------------------------------------------------------------------------
def axial_rope_forward(coords, freqs_h, freqs_w, *, out_dtype=jnp.float32):
    """coords: (b, c, h, w) with c >= 2. Returns (b, h, w, num_heads, dim//2).

    Pass out_dtype=jnp.bfloat16 to halve the HBM writeback of this purely
    store-bound kernel when the consumer tolerates it."""
    b, c, h, w = coords.shape
    num_heads, dq = freqs_h.shape            # dq = dim // 4
    d_out = num_heads * 2 * dq               # num_heads * dim // 2
    m = b * h * w
    out_itemsize = jnp.dtype(out_dtype).itemsize

    # Generation-aware VMEM budgeting (v5e/v6e: 128 MiB; v7x: 64 MiB per TC).
    try:
        vmem_cap = int(getattr(pltpu.get_tpu_info(), "vmem_capacity_bytes",
                               64 << 20))
    except Exception:
        vmem_cap = 64 << 20
    target_tile_bytes = int(min(16 << 20, max(4 << 20, vmem_cap // 8)))

    total_out_bytes = m * d_out * out_itemsize
    pack = _choose_packing(m, d_out, total_out_bytes, target_tile_bytes)
    lane = pack * d_out
    rows = m // pack
    n_terms = 2 * pack

    # Per-head flattened frequency rows; layout per head: [fh (dq), fw (dq)].
    fh_row = jnp.concatenate([freqs_h, jnp.zeros_like(freqs_h)], axis=-1)
    fw_row = jnp.concatenate([jnp.zeros_like(freqs_w), freqs_w], axis=-1)
    fhw = jnp.stack([fh_row.reshape(d_out), fw_row.reshape(d_out)],
                    axis=0).astype(jnp.float32)          # (2, d_out)

    # b c h w -> b h w c, keep (h, w) channels, fold `pack` rows into lanes.
    coords_flat = jnp.transpose(coords, (0, 2, 3, 1))[..., :2].reshape(-1, 2)
    coords_packed = coords_flat.reshape(rows, n_terms).astype(jnp.float32)

    # Per-row VMEM bytes: output lanes + (lane-padded) coords.
    row_bytes = lane * out_itemsize + max(n_terms, 128) * 4
    tm, rows_pad = _pick_row_tile(rows, row_bytes, target_tile_bytes)
    if rows_pad != rows:
        coords_packed = jnp.pad(coords_packed, ((0, rows_pad - rows), (0, 0)))

    # Explicit double-buffer accounting + margin; capped at 3/4 of capacity.
    out_tile_bytes = tm * lane * out_itemsize
    coords_tile_bytes = tm * max(n_terms, 128) * 4
    vmem_demand = 2 * (out_tile_bytes + coords_tile_bytes) + (1 << 20)
    vmem_limit = int(min(max(vmem_demand + (8 << 20), 32 << 20),
                         (vmem_cap * 3) // 4))

    kernel = functools.partial(_axial_rope_kernel, pack=pack, d_out=d_out)

    out = pl.pallas_call(
        kernel,
        out_shape=jax.ShapeDtypeStruct((rows_pad, lane), out_dtype),
        grid_spec=pltpu.PrefetchScalarGridSpec(
            num_scalar_prefetch=0,
            grid=(rows_pad // tm,),
            in_specs=[
                pl.BlockSpec((tm, n_terms), lambda i: (i, 0)),
                pl.BlockSpec((2, d_out), lambda i: (0, 0)),
            ],
            out_specs=pl.BlockSpec((tm, lane), lambda i: (i, 0)),
        ),
        compiler_params=pltpu.CompilerParams(
            dimension_semantics=("parallel",),
            vmem_limit_bytes=vmem_limit,
        ),
    )(coords_packed, fhw)

    if rows_pad != rows:
        out = out[:rows]
    # (rows, pack*d_out) is bit-for-bit row-major (b, h, w, num_heads, dim//2).
    return out.reshape(b, h, w, num_heads, 2 * dq)


# ----------------------------------------------------------------------------
# Pure-JAX reference (direct transcription of the PyTorch forward)
# ----------------------------------------------------------------------------
def axial_rope_reference(coords, freqs_h, freqs_w):
    coords = jnp.transpose(coords, (0, 2, 3, 1))                 # b h w c
    radian_h = coords[..., None, 0:1] * freqs_h                  # b h w nH dq
    radian_w = coords[..., None, 1:2] * freqs_w                  # b h w nH dq
    return jnp.concatenate((radian_h, radian_w), axis=-1)        # b h w nH dim//2


if __name__ == "__main__":
    dim = 32
    num_heads = 4
    max_harmonics = [16, 16]

    b, c, hh, ww = 2, 2, 16, 16        # c=2: (h-coord, w-coord) channels

    key = jax.random.PRNGKey(0)
    coords = jax.random.uniform(key, (b, c, hh, ww), dtype=jnp.float32) * 2.0 - 1.0

    freqs_h, freqs_w = make_axial_rope_freqs(dim, num_heads, max_harmonics)

    out = axial_rope_forward(coords, freqs_h, freqs_w)
    out = jax.block_until_ready(out)

    ref = axial_rope_reference(coords, freqs_h, freqs_w)
    assert out.shape == (b, hh, ww, num_heads, dim // 2), out.shape
    assert jnp.allclose(out, ref, atol=1e-6, rtol=1e-6), "mismatch vs reference"

    print("KERNEL_OK")
</pallas_src>

<mosaic_0001>
module attributes {stable_mosaic.version = 11 : i64} {
  func.func @_axial_rope_kernel(%arg0: i32, %arg1: memref<8x128xf32, #tpu.memory_space<vmem>>, %arg2: memref<2x64xf32, #tpu.memory_space<vmem>>, %arg3: memref<8x4096xf32, #tpu.memory_space<vmem>>) attributes {dimension_semantics = [#tpu.dimension_semantics<parallel>], iteration_bounds = array<i64: 1>, scalar_prefetch = 0 : i64, scratch_operands = 0 : i64, tpu.core_type = #tpu.core_type<tc>, window_params = [{transform_indices = @transform_0, window_bounds = array<i64: 8, 128>}, {pipeline_mode = #tpu.pipeline_mode<synchronous>, transform_indices = @transform_1, window_bounds = array<i64: 2, 64>}, {transform_indices = @transform_2, window_bounds = array<i64: 8, 4096>}]} {
    %c0 = arith.constant 0 : index
    %c0_0 = arith.constant 0 : index
    %0 = vector.load %arg1[%c0, %c0_0] : memref<8x128xf32, #tpu.memory_space<vmem>>, vector<8x128xf32>
    %c0_1 = arith.constant 0 : index
    %c0_2 = arith.constant 0 : index
    %1 = vector.load %arg2[%c0_1, %c0_2] : memref<2x64xf32, #tpu.memory_space<vmem>>, vector<1x64xf32>
    %c1 = arith.constant 1 : index
    %c0_3 = arith.constant 0 : index
    %2 = vector.load %arg2[%c1, %c0_3] : memref<2x64xf32, #tpu.memory_space<vmem>>, vector<1x64xf32>
    %3 = vector.extract_strided_slice %0 {offsets = [0, 0], sizes = [8, 1], strides = [1, 1]} : vector<8x128xf32> to vector<8x1xf32>
    %4 = vector.extract_strided_slice %0 {offsets = [0, 1], sizes = [8, 1], strides = [1, 1]} : vector<8x128xf32> to vector<8x1xf32>
    %5 = vector.broadcast %3 : vector<8x1xf32> to vector<8x64xf32>
    %6 = vector.broadcast %1 : vector<1x64xf32> to vector<8x64xf32>
    %7 = arith.mulf %5, %6 : vector<8x64xf32>
    %8 = vector.broadcast %4 : vector<8x1xf32> to vector<8x64xf32>
    %9 = vector.broadcast %2 : vector<1x64xf32> to vector<8x64xf32>
    %10 = arith.mulf %8, %9 : vector<8x64xf32>
    %11 = arith.addf %7, %10 : vector<8x64xf32>
    %c0_4 = arith.constant 0 : index
    %c0_5 = arith.constant 0 : index
    %12 = vector.load %arg3[%c0_4, %c0_5] : memref<8x4096xf32, #tpu.memory_space<vmem>>, vector<8x64xf32>
    tpu.vector_store %arg3[%c0_4, %c0_5], %11 {strides = array<i32>} : memref<8x4096xf32, #tpu.memory_space<vmem>>, vector<8x64xf32>,
    %13 = vector.extract_strided_slice %0 {offsets = [0, 2], sizes = [8, 1], strides = [1, 1]} : vector<8x128xf32> to vector<8x1xf32>
    %14 = vector.extract_strided_slice %0 {offsets = [0, 3], sizes = [8, 1], strides = [1, 1]} : vector<8x128xf32> to vector<8x1xf32>
    %15 = vector.broadcast %13 : vector<8x1xf32> to vector<8x64xf32>
    %16 = vector.broadcast %1 : vector<1x64xf32> to vector<8x64xf32>
    %17 = arith.mulf %15, %16 : vector<8x64xf32>
    %18 = vector.broadcast %14 : vector<8x1xf32> to vector<8x64xf32>
    %19 = vector.broadcast %2 : vector<1x64xf32> to vector<8x64xf32>
    %20 = arith.mulf %18, %19 : vector<8x64xf32>
    %21 = arith.addf %17, %20 : vector<8x64xf32>
    %c0_6 = arith.constant 0 : index
    %c64 = arith.constant 64 : index
    %22 = vector.load %arg3[%c0_6, %c64] : memref<8x4096xf32, #tpu.memory_space<vmem>>, vector<8x64xf32>
    tpu.vector_store %arg3[%c0_6, %c64], %21 {strides = array<i32>} : memref<8x4096xf32, #tpu.memory_space<vmem>>, vector<8x64xf32>,
    %23 = vector.extract_strided_slice %0 {offsets = [0, 4], sizes = [8, 1], strides = [1, 1]} : vector<8x128xf32> to vector<8x1xf32>
    %24 = vector.extract_strided_slice %0 {offsets = [0, 5], sizes = [8, 1], strides = [1, 1]} : vector<8x128xf32> to vector<8x1xf32>
    %25 = vector.broadcast %23 : vector<8x1xf32> to vector<8x64xf32>
    %26 = vector.broadcast %1 : vector<1x64xf32> to vector<8x64xf32>
    %27 = arith.mulf %25, %26 : vector<8x64xf32>
    %28 = vector.broadcast %24 : vector<8x1xf32> to vector<8x64xf32>
    %29 = vector.broadcast %2 : vector<1x64xf32> to vector<8x64xf32>
    %30 = arith.mulf %28, %29 : vector<8x64xf32>
    %31 = arith.addf %27, %30 : vector<8x64xf32>
    %c0_7 = arith.constant 0 : index
    %c128 = arith.constant 128 : index
    %32 = vector.load %arg3[%c0_7, %c128] : memref<8x4096xf32, #tpu.memory_space<vmem>>, vector<8x64xf32>
    tpu.vector_store %arg3[%c0_7, %c128], %31 {strides = array<i32>} : memref<8x4096xf32, #tpu.memory_space<vmem>>, vector<8x64xf32>,
    %33 = vector.extract_strided_slice %0 {offsets = [0, 6], sizes = [8, 1], strides = [1, 1]} : vector<8x128xf32> to vector<8x1xf32>
    %34 = vector.extract_strided_slice %0 {offsets = [0, 7], sizes = [8, 1], strides = [1, 1]} : vector<8x128xf32> to vector<8x1xf32>
    %35 = vector.broadcast %33 : vector<8x1xf32> to vector<8x64xf32>
    %36 = vector.broadcast %1 : vector<1x64xf32> to vector<8x64xf32>
    %37 = arith.mulf %35, %36 : vector<8x64xf32>
    %38 = vector.broadcast %34 : vector<8x1xf32> to vector<8x64xf32>
    %39 = vector.broadcast %2 : vector<1x64xf32> to vector<8x64xf32>
    %40 = arith.mulf %38, %39 : vector<8x64xf32>
    %41 = arith.addf %37, %40 : vector<8x64xf32>
    %c0_8 = arith.constant 0 : index
    %c192 = arith.constant 192 : index
    %42 = vector.load %arg3[%c0_8, %c192] : memref<8x4096xf32, #tpu.memory_space<vmem>>, vector<8x64xf32>
    tpu.vector_store %arg3[%c0_8, %c192], %41 {strides = array<i32>} : memref<8x4096xf32, #tpu.memory_space<vmem>>, vector<8x64xf32>,
    %43 = vector.extract_strided_slice %0 {offsets = [0, 8], sizes = [8, 1], strides = [1, 1]} : vector<8x128xf32> to vector<8x1xf32>
    %44 = vector.extract_strided_slice %0 {offsets = [0, 9], sizes = [8, 1], strides = [1, 1]} : vector<8x128xf32> to vector<8x1xf32>
    %45 = vector.broadcast %43 : vector<8x1xf32> to vector<8x64xf32>
    %46 = vector.broadcast %1 : vector<1x64xf32> to vector<8x64xf32>
    %47 = arith.mulf %45, %46 : vector<8x64xf32>
    %48 = vector.broadcast %44 : vector<8x1xf32> to vector<8x64xf32>
    %49 = vector.broadcast %2 : vector<1x64xf32> to vector<8x64xf32>
    %50 = arith.mulf %48, %49 : vector<8x64xf32>
    %51 = arith.addf %47, %50 : vector<8x64xf32>
    %c0_9 = arith.constant 0 : index
    %c256 = arith.constant 256 : index
    %52 = vector.load %arg3[%c0_9, %c256] : memref<8x4096xf32, #tpu.memory_space<vmem>>, vector<8x64xf32>
    tpu.vector_store %arg3[%c0_9, %c256], %51 {strides = array<i32>} : memref<8x4096xf32, #tpu.memory_space<vmem>>, vector<8x64xf32>,
    %53 = vector.extract_strided_slice %0 {offsets = [0, 10], sizes = [8, 1], strides = [1, 1]} : vector<8x128xf32> to vector<8x1xf32>
    %54 = vector.extract_strided_slice %0 {offsets = [0, 11], sizes = [8, 1], strides = [1, 1]} : vector<8x128xf32> to vector<8x1xf32>
    %55 = vector.broadcast %53 : vector<8x1xf32> to vector<8x64xf32>
    %56 = vector.broadcast %1 : vector<1x64xf32> to vector<8x64xf32>
    %57 = arith.mulf %55, %56 : vector<8x64xf32>
    %58 = vector.broadcast %54 : vector<8x1xf32> to vector<8x64xf32>
    %59 = vector.broadcast %2 : vector<1x64xf32> to vector<8x64xf32>
    %60 = arith.mulf %58, %59 : vector<8x64xf32>
    %61 = arith.addf %57, %60 : vector<8x64xf32>
    %c0_10 = arith.constant 0 : index
    %c320 = arith.constant 320 : index
    %62 = vector.load %arg3[%c0_10, %c320] : memref<8x4096xf32, #tpu.memory_space<vmem>>, vector<8x64xf32>
    tpu.vector_store %arg3[%c0_10, %c320], %61 {strides = array<i32>} : memref<8x4096xf32, #tpu.memory_space<vmem>>, vector<8x64xf32>,
    %63 = vector.extract_strided_slice %0 {offsets = [0, 12], sizes = [8, 1], strides = [1, 1]} : vector<8x128xf32> to vector<8x1xf32>
    %64 = vector.extract_strided_slice %0 {offsets = [0, 13], sizes = [8, 1], strides = [1, 1]} : vector<8x128xf32> to vector<8x1xf32>
    %65 = vector.broadcast %63 : vector<8x1xf32> to vector<8x64xf32>
    %66 = vector.broadcast %1 : vector<1x64xf32> to vector<8x64xf32>
    %67 = arith.mulf %65, %66 : vector<8x64xf32>
    %68 = vector.broadcast %64 : vector<8x1xf32> to vector<8x64xf32>
    %69 = vector.broadcast %2 : vector<1x64xf32> to vector<8x64xf32>
    %70 = arith.mulf %68, %69 : vector<8x64xf32>
    %71 = arith.addf %67, %70 : vector<8x64xf32>
    %c0_11 = arith.constant 0 : index
    %c384 = arith.constant 384 : index
    %72 = vector.load %arg3[%c0_11, %c384] : memref<8x4096xf32, #tpu.memory_space<vmem>>, vector<8x64xf32>
    tpu.vector_store %arg3[%c0_11, %c384], %71 {strides = array<i32>} : memref<8x4096xf32, #tpu.memory_space<vmem>>, vector<8x64xf32>,
    %73 = vector.extract_strided_slice %0 {offsets = [0, 14], sizes = [8, 1], strides = [1, 1]} : vector<8x128xf32> to vector<8x1xf32>
    %74 = vector.extract_strided_slice %0 {offsets = [0, 15], sizes = [8, 1], strides = [1, 1]} : vector<8x128xf32> to vector<8x1xf32>
    %75 = vector.broadcast %73 : vector<8x1xf32> to vector<8x64xf32>
    %76 = vector.broadcast %1 : vector<1x64xf32> to vector<8x64xf32>
    %77 = arith.mulf %75, %76 : vector<8x64xf32>
    %78 = vector.broadcast %74 : vector<8x1xf32> to vector<8x64xf32>
    %79 = vector.broadcast %2 : vector<1x64xf32> to vector<8x64xf32>
    %80 = arith.mulf %78, %79 : vector<8x64xf32>
    %81 = arith.addf %77, %80 : vector<8x64xf32>
    %c0_12 = arith.constant 0 : index
    %c448 = arith.constant 448 : index
    %82 = vector.load %arg3[%c0_12, %c448] : memref<8x4096xf32, #tpu.memory_space<vmem>>, vector<8x64xf32>
    tpu.vector_store %arg3[%c0_12, %c448], %81 {strides = array<i32>} : memref<8x4096xf32, #tpu.memory_space<vmem>>, vector<8x64xf32>,
    %83 = vector.extract_strided_slice %0 {offsets = [0, 16], sizes = [8, 1], strides = [1, 1]} : vector<8x128xf32> to vector<8x1xf32>
    %84 = vector.extract_strided_slice %0 {offsets = [0, 17], sizes = [8, 1], strides = [1, 1]} : vector<8x128xf32> to vector<8x1xf32>
    %85 = vector.broadcast %83 : vector<8x1xf32> to vector<8x64xf32>
    %86 = vector.broadcast %1 : vector<1x64xf32> to vector<8x64xf32>
    %87 = arith.mulf %85, %86 : vector<8x64xf32>
    %88 = vector.broadcast %84 : vector<8x1xf32> to vector<8x64xf32>
    %89 = vector.broadcast %2 : vector<1x64xf32> to vector<8x64xf32>
    %90 = arith.mulf %88, %89 : vector<8x64xf32>
    %91 = arith.addf %87, %90 : vector<8x64xf32>
    %c0_13 = arith.constant 0 : index
    %c512 = arith.constant 512 : index
    %92 = vector.load %arg3[%c0_13, %c512] : memref<8x4096xf32, #tpu.memory_space<vmem>>, vector<8x64xf32>
    tpu.vector_store %arg3[%c0_13, %c512], %91 {strides = array<i32>} : memref<8x4096xf32, #tpu.memory_space<vmem>>, vector<8x64xf32>,
    %93 = vector.extract_strided_slice %0 {offsets = [0, 18], sizes = [8, 1], strides = [1, 1]} : vector<8x128xf32> to vector<8x1xf32>
    %94 = vector.extract_strided_slice %0 {offsets = [0, 19], sizes = [8, 1], strides = [1, 1]} : vector<8x128xf32> to vector<8x1xf32>
    %95 = vector.broadcast %93 : vector<8x1xf32> to vector<8x64xf32>
    %96 = vector.broadcast %1 : vector<1x64xf32> to vector<8x64xf32>
    %97 = arith.mulf %95, %96 : vector<8x64xf32>
    %98 = vector.broadcast %94 : vector<8x1xf32> to vector<8x64xf32>
    %99 = vector.broadcast %2 : vector<1x64xf32> to vector<8x64xf32>
    %100 = arith.mulf %98, %99 : vector<8x64xf32>
    %101 = arith.addf %97, %100 : vector<8x64xf32>
    %c0_14 = arith.constant 0 : index
    %c576 = arith.constant 576 : index
    %102 = vector.load %arg3[%c0_14, %c576] : memref<8x4096xf32, #tpu.memory_space<vmem>>, vector<8x64xf32>
    tpu.vector_store %arg3[%c0_14, %c576], %101 {strides = array<i32>} : memref<8x4096xf32, #tpu.memory_space<vmem>>, vector<8x64xf32>,
    %103 = vector.extract_strided_slice %0 {offsets = [0, 20], sizes = [8, 1], strides = [1, 1]} : vector<8x128xf32> to vector<8x1xf32>
    %104 = vector.extract_strided_slice %0 {offsets = [0, 21], sizes = [8, 1], strides = [1, 1]} : vector<8x128xf32> to vector<8x1xf32>
    %105 = vector.broadcast %103 : vector<8x1xf32> to vector<8x64xf32>
    %106 = vector.broadcast %1 : vector<1x64xf32> to vector<8x64xf32>
    %107 = arith.mulf %105, %106 : vector<8x64xf32>
    %108 = vector.broadcast %104 : vector<8x1xf32> to vector<8x64xf32>
    %109 = vector.broadcast %2 : vector<1x64xf32> to vector<8x64xf32>
    %110 = arith.mulf %108, %109 : vector<8x64xf32>
    %111 = arith.addf %107, %110 : vector<8x64xf32>
    %c0_15 = arith.constant 0 : index
    %c640 = arith.constant 640 : index
    %112 = vector.load %arg3[%c0_15, %c640] : memref<8x4096xf32, #tpu.memory_space<vmem>>, vector<8x64xf32>
    tpu.vector_store %arg3[%c0_15, %c640], %111 {strides = array<i32>} : memref<8x4096xf32, #tpu.memory_space<vmem>>, vector<8x64xf32>,
    %113 = vector.extract_strided_slice %0 {offsets = [0, 22], sizes = [8, 1], strides = [1, 1]} : vector<8x128xf32> to vector<8x1xf32>
    %114 = vector.extract_strided_slice %0 {offsets = [0, 23], sizes = [8, 1], strides = [1, 1]} : vector<8x128xf32> to vector<8x1xf32>
    %115 = vector.broadcast %113 : vector<8x1xf32> to vector<8x64xf32>
    %116 = vector.broadcast %1 : vector<1x64xf32> to vector<8x64xf32>
    %117 = arith.mulf %115, %116 : vector<8x64xf32>
    %118 = vector.broadcast %114 : vector<8x1xf32> to vector<8x64xf32>
    %119 = vector.broadcast %2 : vector<1x64xf32> to vector<8x64xf32>
    %120 = arith.mulf %118, %119 : vector<8x64xf32>
    %121 = arith.addf %117, %120 : vector<8x64xf32>
    %c0_16 = arith.constant 0 : index
    %c704 = arith.constant 704 : index
    %122 = vector.load %arg3[%c0_16, %c704] : memref<8x4096xf32, #tpu.memory_space<vmem>>, vector<8x64xf32>
    tpu.vector_store %arg3[%c0_16, %c704], %121 {strides = array<i32>} : memref<8x4096xf32, #tpu.memory_space<vmem>>, vector<8x64xf32>,
    %123 = vector.extract_strided_slice %0 {offsets = [0, 24], sizes = [8, 1], strides = [1, 1]} : vector<8x128xf32> to vector<8x1xf32>
    %124 = vector.extract_strided_slice %0 {offsets = [0, 25], sizes = [8, 1], strides = [1, 1]} : vector<8x128xf32> to vector<8x1xf32>
    %125 = vector.broadcast %123 : vector<8x1xf32> to vector<8x64xf32>
    %126 = vector.broadcast %1 : vector<1x64xf32> to vector<8x64xf32>
    %127 = arith.mulf %125, %126 : vector<8x64xf32>
    %128 = vector.broadcast %124 : vector<8x1xf32> to vector<8x64xf32>
    %129 = vector.broadcast %2 : vector<1x64xf32> to vector<8x64xf32>
    %130 = arith.mulf %128, %129 : vector<8x64xf32>
    %131 = arith.addf %127, %130 : vector<8x64xf32>
    %c0_17 = arith.constant 0 : index
    %c768 = arith.constant 768 : index
    %132 = vector.load %arg3[%c0_17, %c768] : memref<8x4096xf32, #tpu.memory_space<vmem>>, vector<8x64xf32>
    tpu.vector_store %arg3[%c0_17, %c768], %131 {strides = array<i32>} : memref<8x4096xf32, #tpu.memory_space<vmem>>, vector<8x64xf32>,
    %133 = vector.extract_strided_slice %0 {offsets = [0, 26], sizes = [8, 1], strides = [1, 1]} : vector<8x128xf32> to vector<8x1xf32>
    %134 = vector.extract_strided_slice %0 {offsets = [0, 27], sizes = [8, 1], strides = [1, 1]} : vector<8x128xf32> to vector<8x1xf32>
    %135 = vector.broadcast %133 : vector<8x1xf32> to vector<8x64xf32>
    %136 = vector.broadcast %1 : vector<1x64xf32> to vector<8x64xf32>
    %137 = arith.mulf %135, %136 : vector<8x64xf32>
    %138 = vector.broadcast %134 : vector<8x1xf32> to vector<8x64xf32>
    %139 = vector.broadcast %2 : vector<1x64xf32> to vector<8x64xf32>
    %140 = arith.mulf %138, %139 : vector<8x64xf32>
    %141 = arith.addf %137, %140 : vector<8x64xf32>
    %c0_18 = arith.constant 0 : index
    %c832 = arith.constant 832 : index
    %142 = vector.load %arg3[%c0_18, %c832] : memref<8x4096xf32, #tpu.memory_space<vmem>>, vector<8x64xf32>
    tpu.vector_store %arg3[%c0_18, %c832], %141 {strides = array<i32>} : memref<8x4096xf32, #tpu.memory_space<vmem>>, vector<8x64xf32>,
    %143 = vector.extract_strided_slice %0 {offsets = [0, 28], sizes = [8, 1], strides = [1, 1]} : vector<8x128xf32> to vector<8x1xf32>
    %144 = vector.extract_strided_slice %0 {offsets = [0, 29], sizes = [8, 1], strides = [1, 1]} : vector<8x128xf32> to vector<8x1xf32>
    %145 = vector.broadcast %143 : vector<8x1xf32> to vector<8x64xf32>
    %146 = vector.broadcast %1 : vector<1x64xf32> to vector<8x64xf32>
    %147 = arith.mulf %145, %146 : vector<8x64xf32>
    %148 = vector.broadcast %144 : vector<8x1xf32> to vector<8x64xf32>
    %149 = vector.broadcast %2 : vector<1x64xf32> to vector<8x64xf32>
    %150 = arith.mulf %148, %149 : vector<8x64xf32>
    %151 = arith.addf %147, %150 : vector<8x64xf32>
    %c0_19 = arith.constant 0 : index
    %c896 = arith.constant 896 : index
    %152 = vector.load %arg3[%c0_19, %c896] : memref<8x4096xf32, #tpu.memory_space<vmem>>, vector<8x64xf32>
    tpu.vector_store %arg3[%c0_19, %c896], %151 {strides = array<i32>} : memref<8x4096xf32, #tpu.memory_space<vmem>>, vector<8x64xf32>,
    %153 = vector.extract_strided_slice %0 {offsets = [0, 30], sizes = [8, 1], strides = [1, 1]} : vector<8x128xf32> to vector<8x1xf32>
    %154 = vector.extract_strided_slice %0 {offsets = [0, 31], sizes = [8, 1], strides = [1, 1]} : vector<8x128xf32> to vector<8x1xf32>
    %155 = vector.broadcast %153 : vector<8x1xf32> to vector<8x64xf32>
    %156 = vector.broadcast %1 : vector<1x64xf32> to vector<8x64xf32>
    %157 = arith.mulf %155, %156 : vector<8x64xf32>
    %158 = vector.broadcast %154 : vector<8x1xf32> to vector<8x64xf32>
    %159 = vector.broadcast %2 : vector<1x64xf32> to vector<8x64xf32>
    %160 = arith.mulf %158, %159 : vector<8x64xf32>
    %161 = arith.addf %157, %160 : vector<8x64xf32>
    %c0_20 = arith.constant 0 : index
    %c960 = arith.constant 960 : index
    %162 = vector.load %arg3[%c0_20, %c960] : memref<8x4096xf32, #tpu.memory_space<vmem>>, vector<8x64xf32>
    tpu.vector_store %arg3[%c0_20, %c960], %161 {strides = array<i32>} : memref<8x4096xf32, #tpu.memory_space<vmem>>, vector<8x64xf32>,
    %163 = vector.extract_strided_slice %0 {offsets = [0, 32], sizes = [8, 1], strides = [1, 1]} : vector<8x128xf32> to vector<8x1xf32>
    %164 = vector.extract_strided_slice %0 {offsets = [0, 33], sizes = [8, 1], strides = [1, 1]} : vector<8x128xf32> to vector<8x1xf32>
    %165 = vector.broadcast %163 : vector<8x1xf32> to vector<8x64xf32>
    %166 = vector.broadcast %1 : vector<1x64xf32> to vector<8x64xf32>
    %167 = arith.mulf %165, %166 : vector<8x64xf32>
    %168 = vector.broadcast %164 : vector<8x1xf32> to vector<8x64xf32>
    %169 = vector.broadcast %2 : vector<1x64xf32> to vector<8x64xf32>
    %170 = arith.mulf %168, %169 : vector<8x64xf32>
    %171 = arith.addf %167, %170 : vector<8x64xf32>
    %c0_21 = arith.constant 0 : index
    %c1024 = arith.constant 1024 : index
    %172 = vector.load %arg3[%c0_21, %c1024] : memref<8x4096xf32, #tpu.memory_space<vmem>>, vector<8x64xf32>
    tpu.vector_store %arg3[%c0_21, %c1024], %171 {strides = array<i32>} : memref<8x4096xf32, #tpu.memory_space<vmem>>, vector<8x64xf32>,
    %173 = vector.extract_strided_slice %0 {offsets = [0, 34], sizes = [8, 1], strides = [1, 1]} : vector<8x128xf32> to vector<8x1xf32>
    %174 = vector.extract_strided_slice %0 {offsets = [0, 35], sizes = [8, 1], strides = [1, 1]} : vector<8x128xf32> to vector<8x1xf32>
    %175 = vector.broadcast %173 : vector<8x1xf32> to vector<8x64xf32>
    %176 = vector.broadcast %1 : vector<1x64xf32> to vector<8x64xf32>
    %177 = arith.mulf %175, %176 : vector<8x64xf32>
    %178 = vector.broadcast %174 : vector<8x1xf32> to vector<8x64xf32>
    %179 = vector.broadcast %2 : vector<1x64xf32> to vector<8x64xf32>
    %180 = arith.mulf %178, %179 : vector<8x64xf32>
    %181 = arith.addf %177, %180 : vector<8x64xf32>
    %c0_22 = arith.constant 0 : index
    %c1088 = arith.constant 1088 : index
    %182 = vector.load %arg3[%c0_22, %c1088] : memref<8x4096xf32, #tpu.memory_space<vmem>>, vector<8x64xf32>
    tpu.vector_store %arg3[%c0_22, %c1088], %181 {strides = array<i32>} : memref<8x4096xf32, #tpu.memory_space<vmem>>, vector<8x64xf32>,
    %183 = vector.extract_strided_slice %0 {offsets = [0, 36], sizes = [8, 1], strides = [1, 1]} : vector<8x128xf32> to vector<8x1xf32>
    %184 = vector.extract_strided_slice %0 {offsets = [0, 37], sizes = [8, 1], strides = [1, 1]} : vector<8x128xf32> to vector<8x1xf32>
    %185 = vector.broadcast %183 : vector<8x1xf32> to vector<8x64xf32>
    %186 = vector.broadcast %1 : vector<1x64xf32> to vector<8x64xf32>
    %187 = arith.mulf %185, %186 : vector<8x64xf32>
    %188 = vector.broadcast %184 : vector<8x1xf32> to vector<8x64xf32>
    %189 = vector.broadcast %2 : vector<1x64xf32> to vector<8x64xf32>
    %190 = arith.mulf %188, %189 : vector<8x64xf32>
    %191 = arith.addf %187, %190 : vector<8x64xf32>
    %c0_23 = arith.constant 0 : index
    %c1152 = arith.constant 1152 : index
    %192 = vector.load %arg3[%c0_23, %c1152] : memref<8x4096xf32, #tpu.memory_space<vmem>>, vector<8x64xf32>
    tpu.vector_store %arg3[%c0_23, %c1152], %191 {strides = array<i32>} : memref<8x4096xf32, #tpu.memory_space<vmem>>, vector<8x64xf32>,
    %193 = vector.extract_strided_slice %0 {offsets = [0, 38], sizes = [8, 1], strides = [1, 1]} : vector<8x128xf32> to vector<8x1xf32>
    %194 = vector.extract_strided_slice %0 {offsets = [0, 39], sizes = [8, 1], strides = [1, 1]} : vector<8x128xf32> to vector<8x1xf32>
    %195 = vector.broadcast %193 : vector<8x1xf32> to vector<8x64xf32>
    %196 = vector.broadcast %1 : vector<1x64xf32> to vector<8x64xf32>
    %197 = arith.mulf %195, %196 : vector<8x64xf32>
    %198 = vector.broadcast %194 : vector<8x1xf32> to vector<8x64xf32>
    %199 = vector.broadcast %2 : vector<1x64xf32> to vector<8x64xf32>
    %200 = arith.mulf %198, %199 : vector<8x64xf32>
    %201 = arith.addf %197, %200 : vector<8x64xf32>
    %c0_24 = arith.constant 0 : index
    %c1216 = arith.constant 1216 : index
    %202 = vector.load %arg3[%c0_24, %c1216] : memref<8x4096xf32, #tpu.memory_space<vmem>>, vector<8x64xf32>
    tpu.vector_store %arg3[%c0_24, %c1216], %201 {strides = array<i32>} : memref<8x4096xf32, #tpu.memory_space<vmem>>, vector<8x64xf32>,
    %203 = vector.extract_strided_slice %0 {offsets = [0, 40], sizes = [8, 1], strides = [1, 1]} : vector<8x128xf32> to vector<8x1xf32>
    %204 = vector.extract_strided_slice %0 {offsets = [0, 41], sizes = [8, 1], strides = [1, 1]} : vector<8x128xf32> to vector<8x1xf32>
    %205 = vector.broadcast %203 : vector<8x1xf32> to vector<8x64xf32>
    %206 = vector.broadcast %1 : vector<1x64xf32> to vector<8x64xf32>
    %207 = arith.mulf %205, %206 : vector<8x64xf32>
    %208 = vector.broadcast %204 : vector<8x1xf32> to vector<8x64xf32>
    %209 = vector.broadcast %2 : vector<1x64xf32> to vector<8x64xf32>
    %210 = arith.mulf %208, %209 : vector<8x64xf32>
    %211 = arith.addf %207, %210 : vector<8x64xf32>
    %c0_25 = arith.constant 0 : index
    %c1280 = arith.constant 1280 : index
    %212 = vector.load %arg3[%c0_25, %c1280] : memref<8x4096xf32, #tpu.memory_space<vmem>>, vector<8x64xf32>
    tpu.vector_store %arg3[%c0_25, %c1280], %211 {strides = array<i32>} : memref<8x4096xf32, #tpu.memory_space<vmem>>, vector<8x64xf32>,
    %213 = vector.extract_strided_slice %0 {offsets = [0, 42], sizes = [8, 1], strides = [1, 1]} : vector<8x128xf32> to vector<8x1xf32>
    %214 = vector.extract_strided_slice %0 {offsets = [0, 43], sizes = [8, 1], strides = [1, 1]} : vector<8x128xf32> to vector<8x1xf32>
    %215 = vector.broadcast %213 : vector<8x1xf32> to vector<8x64xf32>
    %216 = vector.broadcast %1 : vector<1x64xf32> to vector<8x64xf32>
    %217 = arith.mulf %215, %216 : vector<8x64xf32>
    %218 = vector.broadcast %214 : vector<8x1xf32> to vector<8x64xf32>
    %219 = vector.broadcast %2 : vector<1x64xf32> to vector<8x64xf32>
    %220 = arith.mulf %218, %219 : vector<8x64xf32>
    %221 = arith.addf %217, %220 : vector<8x64xf32>
    %c0_26 = arith.constant 0 : index
    %c1344 = arith.constant 1344 : index
    %222 = vector.load %arg3[%c0_26, %c1344] : memref<8x4096xf32, #tpu.memory_space<vmem>>, vector<8x64xf32>
    tpu.vector_store %arg3[%c0_26, %c1344], %221 {strides = array<i32>} : memref<8x4096xf32, #tpu.memory_space<vmem>>, vector<8x64xf32>,
    %223 = vector.extract_strided_slice %0 {offsets = [0, 44], sizes = [8, 1], strides = [1, 1]} : vector<8x128xf32> to vector<8x1xf32>
    %224 = vector.extract_strided_slice %0 {offsets = [0, 45], sizes = [8, 1], strides = [1, 1]} : vector<8x128xf32> to vector<8x1xf32>
    %225 = vector.broadcast %223 : vector<8x1xf32> to vector<8x64xf32>
    %226 = vector.broadcast %1 : vector<1x64xf32> to vector<8x64xf32>
    %227 = arith.mulf %225, %226 : vector<8x64xf32>
    %228 = vector.broadcast %224 : vector<8x1xf32> to vector<8x64xf32>
    %229 = vector.broadcast %2 : vector<1x64xf32> to vector<8x64xf32>
    %230 = arith.mulf %228, %229 : vector<8x64xf32>
    %231 = arith.addf %227, %230 : vector<8x64xf32>
    %c0_27 = arith.constant 0 : index
    %c1408 = arith.constant 1408 : index
    %232 = vector.load %arg3[%c0_27, %c1408] : memref<8x4096xf32, #tpu.memory_space<vmem>>, vector<8x64xf32>
    tpu.vector_store %arg3[%c0_27, %c1408], %231 {strides = array<i32>} : memref<8x4096xf32, #tpu.memory_space<vmem>>, vector<8x64xf32>,
    %233 = vector.extract_strided_slice %0 {offsets = [0, 46], sizes = [8, 1], strides = [1, 1]} : vector<8x128xf32> to vector<8x1xf32>
    %234 = vector.extract_strided_slice %0 {offsets = [0, 47], sizes = [8, 1], strides = [1, 1]} : vector<8x128xf32> to vector<8x1xf32>
    %235 = vector.broadcast %233 : vector<8x1xf32> to vector<8x64xf32>
    %236 = vector.broadcast %1 : vector<1x64xf32> to vector<8x64xf32>
    %237 = arith.mulf %235, %236 : vector<8x64xf32>
    %238 = vector.broadcast %234 : vector<8x1xf32> to vector<8x64xf32>
    %239 = vector.broadcast %2 : vector<1x64xf32> to vector<8x64xf32>
    %240 = arith.mulf %238, %239 : vector<8x64xf32>
    %241 = arith.addf %237, %240 : vector<8x64xf32>
    %c0_28 = arith.constant 0 : index
    %c1472 = arith.constant 1472 : index
    %242 = vector.load %arg3[%c0_28, %c1472] : memref<8x4096xf32, #tpu.memory_space<vmem>>, vector<8x64xf32>
    tpu.vector_store %arg3[%c0_28, %c1472], %241 {strides = array<i32>} : memref<8x4096xf32, #tpu.memory_space<vmem>>, vector<8x64xf32>,
    %243 = vector.extract_strided_slice %0 {offsets = [0, 48], sizes = [8, 1], strides = [1, 1]} : vector<8x128xf32> to vector<8x1xf32>
    %244 = vector.extract_strided_slice %0 {offsets = [0, 49], sizes = [8, 1], strides = [1, 1]} : vector<8x128xf32> to vector<8x1xf32>
    %245 = vector.broadcast %243 : vector<8x1xf32> to vector<8x64xf32>
    %246 = vector.broadcast %1 : vector<1x64xf32> to vector<8x64xf32>
    %247 = arith.mulf %245, %246 : vector<8x64xf32>
    %248 = vector.broadcast %244 : vector<8x1xf32> to vector<8x64xf32>
    %249 = vector.broadcast %2 : vector<1x64xf32> to vector<8x64xf32>
    %250 = arith.mulf %248, %249 : vector<8x64xf32>
    %251 = arith.addf %247, %250 : vector<8x64xf32>
    %c0_29 = arith.constant 0 : index
    %c1536 = arith.constant 1536 : index
    %252 = vector.load %arg3[%c0_29, %c1536] : memref<8x4096xf32, #tpu.memory_space<vmem>>, vector<8x64xf32>
    tpu.vector_store %arg3[%c0_29, %c1536], %251 {strides = array<i32>} : memref<8x4096xf32, #tpu.memory_space<vmem>>, vector<8x64xf32>,
    %253 = vector.extract_strided_slice %0 {offsets = [0, 50], sizes = [8, 1], strides = [1, 1]} : vector<8x128xf32> to vector<8x1xf32>
    %254 = vector.extract_strided_slice %0 {offsets = [0, 51], sizes = [8, 1], strides = [1, 1]} : vector<8x128xf32> to vector<8x1xf32>
    %255 = vector.broadcast %253 : vector<8x1xf32> to vector<8x64xf32>
    %256 = vector.broadcast %1 : vector<1x64xf32> to vector<8x64xf32>
    %257 = arith.mulf %255, %256 : vector<8x64xf32>
    %258 = vector.broadcast %254 : vector<8x1xf32> to vector<8x64xf32>
    %259 = vector.broadcast %2 : vector<1x64xf32> to vector<8x64xf32>
    %260 = arith.mulf %258, %259 : vector<8x64xf32>
    %261 = arith.addf %257, %260 : vector<8x64xf32>
    %c0_30 = arith.constant 0 : index
    %c1600 = arith.constant 1600 : index
    %262 = vector.load %arg3[%c0_30, %c1600] : memref<8x4096xf32, #tpu.memory_space<vmem>>, vector<8x64xf32>
    tpu.vector_store %arg3[%c0_30, %c1600], %261 {strides = array<i32>} : memref<8x4096xf32, #tpu.memory_space<vmem>>, vector<8x64xf32>,
    %263 = vector.extract_strided_slice %0 {offsets = [0, 52], sizes = [8, 1], strides = [1, 1]} : vector<8x128xf32> to vector<8x1xf32>
    %264 = vector.extract_strided_slice %0 {offsets = [0, 53], sizes = [8, 1], strides = [1, 1]} : vector<8x128xf32> to vector<8x1xf32>
    %265 = vector.broadcast %263 : vector<8x1xf32> to vector<8x64xf32>
    %266 = vector.broadcast %1 : vector<1x64xf32> to vector<8x64xf32>
    %267 = arith.mulf %265, %266 : vector<8x64xf32>
    %268 = vector.broadcast %264 : vector<8x1xf32> to vector<8x64xf32>
    %269 = vector.broadcast %2 : vector<1x64xf32> to vector<8x64xf32>
    %270 = arith.mulf %268, %269 : vector<8x64xf32>
    %271 = arith.addf %267, %270 : vector<8x64xf32>
    %c0_31 = arith.constant 0 : index
    %c1664 = arith.constant 1664 : index
    %272 = vector.load %arg3[%c0_31, %c1664] : memref<8x4096xf32, #tpu.memory_space<vmem>>, vector<8x64xf32>
    tpu.vector_store %arg3[%c0_31, %c1664], %271 {strides = array<i32>} : memref<8x4096xf32, #tpu.memory_space<vmem>>, vector<8x64xf32>,
    %273 = vector.extract_strided_slice %0 {offsets = [0, 54], sizes = [8, 1], strides = [1, 1]} : vector<8x128xf32> to vector<8x1xf32>
    %274 = vector.extract_strided_slice %0 {offsets = [0, 55], sizes = [8, 1], strides = [1, 1]} : vector<8x128xf32> to vector<8x1xf32>
    %275 = vector.broadcast %273 : vector<8x1xf32> to vector<8x64xf32>
    %276 = vector.broadcast %1 : vector<1x64xf32> to vector<8x64xf32>
    %277 = arith.mulf %275, %276 : vector<8x64xf32>
    %278 = vector.broadcast %274 : vector<8x1xf32> to vector<8x64xf32>
    %279 = vector.broadcast %2 : vector<1x64xf32> to vector<8x64xf32>
    %280 = arith.mulf %278, %279 : vector<8x64xf32>
    %281 = arith.addf %277, %280 : vector<8x64xf32>
    %c0_32 = arith.constant 0 : index
    %c1728 = arith.constant 1728 : index
    %282 = vector.load %arg3[%c0_32, %c1728] : memref<8x4096xf32, #tpu.memory_space<vmem>>, vector<8x64xf32>
    tpu.vector_store %arg3[%c0_32, %c1728], %281 {strides = array<i32>} : memref<8x4096xf32, #tpu.memory_space<vmem>>, vector<8x64xf32>,
    %283 = vector.extract_strided_slice %0 {offsets = [0, 56], sizes = [8, 1], strides = [1, 1]} : vector<8x128xf32> to vector<8x1xf32>
    %284 = vector.extract_strided_slice %0 {offsets = [0, 57], sizes = [8, 1], strides = [1, 1]} : vector<8x128xf32> to vector<8x1xf32>
    %285 = vector.broadcast %283 : vector<8x1xf32> to vector<8x64xf32>
    %286 = vector.broadcast %1 : vector<1x64xf32> to vector<8x64xf32>
    %287 = arith.mulf %285, %286 : vector<8x64xf32>
    %288 = vector.broadcast %284 : vector<8x1xf32> to vector<8x64xf32>
    %289 = vector.broadcast %2 : vector<1x64xf32> to vector<8x64xf32>
    %290 = arith.mulf %288, %289 : vector<8x64xf32>
    %291 = arith.addf %287, %290 : vector<8x64xf32>
    %c0_33 = arith.constant 0 : index
    %c1792 = arith.constant 1792 : index
    %292 = vector.load %arg3[%c0_33, %c1792] : memref<8x4096xf32, #tpu.memory_space<vmem>>, vector<8x64xf32>
    tpu.vector_store %arg3[%c0_33, %c1792], %291 {strides = array<i32>} : memref<8x4096xf32, #tpu.memory_space<vmem>>, vector<8x64xf32>,
    %293 = vector.extract_strided_slice %0 {offsets = [0, 58], sizes = [8, 1], strides = [1, 1]} : vector<8x128xf32> to vector<8x1xf32>
    %294 = vector.extract_strided_slice %0 {offsets = [0, 59], sizes = [8, 1], strides = [1, 1]} : vector<8x128xf32> to vector<8x1xf32>
    %295 = vector.broadcast %293 : vector<8x1xf32> to vector<8x64xf32>
    %296 = vector.broadcast %1 : vector<1x64xf32> to vector<8x64xf32>
    %297 = arith.mulf %295, %296 : vector<8x64xf32>
    %298 = vector.broadcast %294 : vector<8x1xf32> to vector<8x64xf32>
    %299 = vector.broadcast %2 : vector<1x64xf32> to vector<8x64xf32>
    %300 = arith.mulf %298, %299 : vector<8x64xf32>
    %301 = arith.addf %297, %300 : vector<8x64xf32>
    %c0_34 = arith.constant 0 : index
    %c1856 = arith.constant 1856 : index
    %302 = vector.load %arg3[%c0_34, %c1856] : memref<8x4096xf32, #tpu.memory_space<vmem>>, vector<8x64xf32>
    tpu.vector_store %arg3[%c0_34, %c1856], %301 {strides = array<i32>} : memref<8x4096xf32, #tpu.memory_space<vmem>>, vector<8x64xf32>,
    %303 = vector.extract_strided_slice %0 {offsets = [0, 60], sizes = [8, 1], strides = [1, 1]} : vector<8x128xf32> to vector<8x1xf32>
    %304 = vector.extract_strided_slice %0 {offsets = [0, 61], sizes = [8, 1], strides = [1, 1]} : vector<8x128xf32> to vector<8x1xf32>
    %305 = vector.broadcast %303 : vector<8x1xf32> to vector<8x64xf32>
    %306 = vector.broadcast %1 : vector<1x64xf32> to vector<8x64xf32>
    %307 = arith.mulf %305, %306 : vector<8x64xf32>
    %308 = vector.broadcast %304 : vector<8x1xf32> to vector<8x64xf32>
    %309 = vector.broadcast %2 : vector<1x64xf32> to vector<8x64xf32>
    %310 = arith.mulf %308, %309 : vector<8x64xf32>
    %311 = arith.addf %307, %310 : vector<8x64xf32>
    %c0_35 = arith.constant 0 : index
    %c1920 = arith.constant 1920 : index
    %312 = vector.load %arg3[%c0_35, %c1920] : memref<8x4096xf32, #tpu.memory_space<vmem>>, vector<8x64xf32>
    tpu.vector_store %arg3[%c0_35, %c1920], %311 {strides = array<i32>} : memref<8x4096xf32, #tpu.memory_space<vmem>>, vector<8x64xf32>,
    %313 = vector.extract_strided_slice %0 {offsets = [0, 62], sizes = [8, 1], strides = [1, 1]} : vector<8x128xf32> to vector<8x1xf32>
    %314 = vector.extract_strided_slice %0 {offsets = [0, 63], sizes = [8, 1], strides = [1, 1]} : vector<8x128xf32> to vector<8x1xf32>
    %315 = vector.broadcast %313 : vector<8x1xf32> to vector<8x64xf32>
    %316 = vector.broadcast %1 : vector<1x64xf32> to vector<8x64xf32>
    %317 = arith.mulf %315, %316 : vector<8x64xf32>
    %318 = vector.broadcast %314 : vector<8x1xf32> to vector<8x64xf32>
    %319 = vector.broadcast %2 : vector<1x64xf32> to vector<8x64xf32>
    %320 = arith.mulf %318, %319 : vector<8x64xf32>
    %321 = arith.addf %317, %320 : vector<8x64xf32>
    %c0_36 = arith.constant 0 : index
    %c1984 = arith.constant 1984 : index
    %322 = vector.load %arg3[%c0_36, %c1984] : memref<8x4096xf32, #tpu.memory_space<vmem>>, vector<8x64xf32>
    tpu.vector_store %arg3[%c0_36, %c1984], %321 {strides = array<i32>} : memref<8x4096xf32, #tpu.memory_space<vmem>>, vector<8x64xf32>,
    %323 = vector.extract_strided_slice %0 {offsets = [0, 64], sizes = [8, 1], strides = [1, 1]} : vector<8x128xf32> to vector<8x1xf32>
    %324 = vector.extract_strided_slice %0 {offsets = [0, 65], sizes = [8, 1], strides = [1, 1]} : vector<8x128xf32> to vector<8x1xf32>
    %325 = vector.broadcast %323 : vector<8x1xf32> to vector<8x64xf32>
    %326 = vector.broadcast %1 : vector<1x64xf32> to vector<8x64xf32>
    %327 = arith.mulf %325, %326 : vector<8x64xf32>
    %328 = vector.broadcast %324 : vector<8x1xf32> to vector<8x64xf32>
    %329 = vector.broadcast %2 : vector<1x64xf32> to vector<8x64xf32>
    %330 = arith.mulf %328, %329 : vector<8x64xf32>
    %331 = arith.addf %327, %330 : vector<8x64xf32>
    %c0_37 = arith.constant 0 : index
    %c2048 = arith.constant 2048 : index
    %332 = vector.load %arg3[%c0_37, %c2048] : memref<8x4096xf32, #tpu.memory_space<vmem>>, vector<8x64xf32>
    tpu.vector_store %arg3[%c0_37, %c2048], %331 {strides = array<i32>} : memref<8x4096xf32, #tpu.memory_space<vmem>>, vector<8x64xf32>,
    %333 = vector.extract_strided_slice %0 {offsets = [0, 66], sizes = [8, 1], strides = [1, 1]} : vector<8x128xf32> to vector<8x1xf32>
    %334 = vector.extract_strided_slice %0 {offsets = [0, 67], sizes = [8, 1], strides = [1, 1]} : vector<8x128xf32> to vector<8x1xf32>
    %335 = vector.broadcast %333 : vector<8x1xf32> to vector<8x64xf32>
    %336 = vector.broadcast %1 : vector<1x64xf32> to vector<8x64xf32>
    %337 = arith.mulf %335, %336 : vector<8x64xf32>
    %338 = vector.broadcast %334 : vector<8x1xf32> to vector<8x64xf32>
    %339 = vector.broadcast %2 : vector<1x64xf32> to vector<8x64xf32>
    %340 = arith.mulf %338, %339 : vector<8x64xf32>
    %341 = arith.addf %337, %340 : vector<8x64xf32>
    %c0_38 = arith.constant 0 : index
    %c2112 = arith.constant 2112 : index
    %342 = vector.load %arg3[%c0_38, %c2112] : memref<8x4096xf32, #tpu.memory_space<vmem>>, vector<8x64xf32>
    tpu.vector_store %arg3[%c0_38, %c2112], %341 {strides = array<i32>} : memref<8x4096xf32, #tpu.memory_space<vmem>>, vector<8x64xf32>,
    %343 = vector.extract_strided_slice %0 {offsets = [0, 68], sizes = [8, 1], strides = [1, 1]} : vector<8x128xf32> to vector<8x1xf32>
    %344 = vector.extract_strided_slice %0 {offsets = [0, 69], sizes = [8, 1], strides = [1, 1]} : vector<8x128xf32> to vector<8x1xf32>
    %345 = vector.broadcast %343 : vector<8x1xf32> to vector<8x64xf32>
    %346 = vector.broadcast %1 : vector<1x64xf32> to vector<8x64xf32>
    %347 = arith.mulf %345, %346 : vector<8x64xf32>
    %348 = vector.broadcast %344 : vector<8x1xf32> to vector<8x64xf32>
    %349 = vector.broadcast %2 : vector<1x64xf32> to vector<8x64xf32>
    %350 = arith.mulf %348, %349 : vector<8x64xf32>
    %351 = arith.addf %347, %350 : vector<8x64xf32>
    %c0_39 = arith.constant 0 : index
    %c2176 = arith.constant 2176 : index
    %352 = vector.load %arg3[%c0_39, %c2176] : memref<8x4096xf32, #tpu.memory_space<vmem>>, vector<8x64xf32>
    tpu.vector_store %arg3[%c0_39, %c2176], %351 {strides = array<i32>} : memref<8x4096xf32, #tpu.memory_space<vmem>>, vector<8x64xf32>,
    %353 = vector.extract_strided_slice %0 {offsets = [0, 70], sizes = [8, 1], strides = [1, 1]} : vector<8x128xf32> to vector<8x1xf32>
    %354 = vector.extract_strided_slice %0 {offsets = [0, 71], sizes = [8, 1], strides = [1, 1]} : vector<8x128xf32> to vector<8x1xf32>
    %355 = vector.broadcast %353 : vector<8x1xf32> to vector<8x64xf32>
    %356 = vector.broadcast %1 : vector<1x64xf32> to vector<8x64xf32>
    %357 = arith.mulf %355, %356 : vector<8x64xf32>
    %358 = vector.broadcast %354 : vector<8x1xf32> to vector<8x64xf32>
    %359 = vector.broadcast %2 : vector<1x64xf32> to vector<8x64xf32>
    %360 = arith.mulf %358, %359 : vector<8x64xf32>
    %361 = arith.addf %357, %360 : vector<8x64xf32>
    %c0_40 = arith.constant 0 : index
    %c2240 = arith.constant 2240 : index
    %362 = vector.load %arg3[%c0_40, %c2240] : memref<8x4096xf32, #tpu.memory_space<vmem>>, vector<8x64xf32>
    tpu.vector_store %arg3[%c0_40, %c2240], %361 {strides = array<i32>} : memref<8x4096xf32, #tpu.memory_space<vmem>>, vector<8x64xf32>,
    %363 = vector.extract_strided_slice %0 {offsets = [0, 72], sizes = [8, 1], strides = [1, 1]} : vector<8x128xf32> to vector<8x1xf32>
    %364 = vector.extract_strided_slice %0 {offsets = [0, 73], sizes = [8, 1], strides = [1, 1]} : vector<8x128xf32> to vector<8x1xf32>
    %365 = vector.broadcast %363 : vector<8x1xf32> to vector<8x64xf32>
    %366 = vector.broadcast %1 : vector<1x64xf32> to vector<8x64xf32>
    %367 = arith.mulf %365, %366 : vector<8x64xf32>
    %368 = vector.broadcast %364 : vector<8x1xf32> to vector<8x64xf32>
    %369 = vector.broadcast %2 : vector<1x64xf32> to vector<8x64xf32>
    %370 = arith.mulf %368, %369 : vector<8x64xf32>
    %371 = arith.addf %367, %370 : vector<8x64xf32>
    %c0_41 = arith.constant 0 : index
    %c2304 = arith.constant 2304 : index
    %372 = vector.load %arg3[%c0_41, %c2304] : memref<8x4096xf32, #tpu.memory_space<vmem>>, vector<8x64xf32>
    tpu.vector_store %arg3[%c0_41, %c2304], %371 {strides = array<i32>} : memref<8x4096xf32, #tpu.memory_space<vmem>>, vector<8x64xf32>,
    %373 = vector.extract_strided_slice %0 {offsets = [0, 74], sizes = [8, 1], strides = [1, 1]} : vector<8x128xf32> to vector<8x1xf32>
    %374 = vector.extract_strided_slice %0 {offsets = [0, 75], sizes = [8, 1], strides = [1, 1]} : vector<8x128xf32> to vector<8x1xf32>
    %375 = vector.broadcast %373 : vector<8x1xf32> to vector<8x64xf32>
    %376 = vector.broadcast %1 : vector<1x64xf32> to vector<8x64xf32>
    %377 = arith.mulf %375, %376 : vector<8x64xf32>
    %378 = vector.broadcast %374 : vector<8x1xf32> to vector<8x64xf32>
    %379 = vector.broadcast %2 : vector<1x64xf32> to vector<8x64xf32>
    %380 = arith.mulf %378, %379 : vector<8x64xf32>
    %381 = arith.addf %377, %380 : vector<8x64xf32>
    %c0_42 = arith.constant 0 : index
    %c2368 = arith.constant 2368 : index
    %382 = vector.load %arg3[%c0_42, %c2368] : memref<8x4096xf32, #tpu.memory_space<vmem>>, vector<8x64xf32>
    tpu.vector_store %arg3[%c0_42, %c2368], %381 {strides = array<i32>} : memref<8x4096xf32, #tpu.memory_space<vmem>>, vector<8x64xf32>,
    %383 = vector.extract_strided_slice %0 {offsets = [0, 76], sizes = [8, 1], strides = [1, 1]} : vector<8x128xf32> to vector<8x1xf32>
    %384 = vector.extract_strided_slice %0 {offsets = [0, 77], sizes = [8, 1], strides = [1, 1]} : vector<8x128xf32> to vector<8x1xf32>
    %385 = vector.broadcast %383 : vector<8x1xf32> to vector<8x64xf32>
    %386 = vector.broadcast %1 : vector<1x64xf32> to vector<8x64xf32>
    %387 = arith.mulf %385, %386 : vector<8x64xf32>
    %388 = vector.broadcast %384 : vector<8x1xf32> to vector<8x64xf32>
    %389 = vector.broadcast %2 : vector<1x64xf32> to vector<8x64xf32>
    %390 = arith.mulf %388, %389 : vector<8x64xf32>
    %391 = arith.addf %387, %390 : vector<8x64xf32>
    %c0_43 = arith.constant 0 : index
    %c2432 = arith.constant 2432 : index
    %392 = vector.load %arg3[%c0_43, %c2432] : memref<8x4096xf32, #tpu.memory_space<vmem>>, vector<8x64xf32>
    tpu.vector_store %arg3[%c0_43, %c2432], %391 {strides = array<i32>} : memref<8x4096xf32, #tpu.memory_space<vmem>>, vector<8x64xf32>,
    %393 = vector.extract_strided_slice %0 {offsets = [0, 78], sizes = [8, 1], strides = [1, 1]} : vector<8x128xf32> to vector<8x1xf32>
    %394 = vector.extract_strided_slice %0 {offsets = [0, 79], sizes = [8, 1], strides = [1, 1]} : vector<8x128xf32> to vector<8x1xf32>
    %395 = vector.broadcast %393 : vector<8x1xf32> to vector<8x64xf32>
    %396 = vector.broadcast %1 : vector<1x64xf32> to vector<8x64xf32>
    %397 = arith.mulf %395, %396 : vector<8x64xf32>
    %398 = vector.broadcast %394 : vector<8x1xf32> to vector<8x64xf32>
    %399 = vector.broadcast %2 : vector<1x64xf32> to vector<8x64xf32>
    %400 = arith.mulf %398, %399 : vector<8x64xf32>
    %401 = arith.addf %397, %400 : vector<8x64xf32>
    %c0_44 = arith.constant 0 : index
    %c2496 = arith.constant 2496 : index
    %402 = vector.load %arg3[%c0_44, %c2496] : memref<8x4096xf32, #tpu.memory_space<vmem>>, vector<8x64xf32>
    tpu.vector_store %arg3[%c0_44, %c2496], %401 {strides = array<i32>} : memref<8x4096xf32, #tpu.memory_space<vmem>>, vector<8x64xf32>,
    %403 = vector.extract_strided_slice %0 {offsets = [0, 80], sizes = [8, 1], strides = [1, 1]} : vector<8x128xf32> to vector<8x1xf32>
    %404 = vector.extract_strided_slice %0 {offsets = [0, 81], sizes = [8, 1], strides = [1, 1]} : vector<8x128xf32> to vector<8x1xf32>
    %405 = vector.broadcast %403 : vector<8x1xf32> to vector<8x64xf32>
    %406 = vector.broadcast %1 : vector<1x64xf32> to vector<8x64xf32>
    %407 = arith.mulf %405, %406 : vector<8x64xf32>
    %408 = vector.broadcast %404 : vector<8x1xf32> to vector<8x64xf32>
    %409 = vector.broadcast %2 : vector<1x64xf32> to vector<8x64xf32>
    %410 = arith.mulf %408, %409 : vector<8x64xf32>
    %411 = arith.addf %407, %410 : vector<8x64xf32>
    %c0_45 = arith.constant 0 : index
    %c2560 = arith.constant 2560 : index
    %412 = vector.load %arg3[%c0_45, %c2560] : memref<8x4096xf32, #tpu.memory_space<vmem>>, vector<8x64xf32>
    tpu.vector_store %arg3[%c0_45, %c2560], %411 {strides = array<i32>} : memref<8x4096xf32, #tpu.memory_space<vmem>>, vector<8x64xf32>,
    %413 = vector.extract_strided_slice %0 {offsets = [0, 82], sizes = [8, 1], strides = [1, 1]} : vector<8x128xf32> to vector<8x1xf32>
    %414 = vector.extract_strided_slice %0 {offsets = [0, 83], sizes = [8, 1], strides = [1, 1]} : vector<8x128xf32> to vector<8x1xf32>
    %415 = vector.broadcast %413 : vector<8x1xf32> to vector<8x64xf32>
    %416 = vector.broadcast %1 : vector<1x64xf32> to vector<8x64xf32>
    %417 = arith.mulf %415, %416 : vector<8x64xf32>
    %418 = vector.broadcast %414 : vector<8x1xf32> to vector<8x64xf32>
    %419 = vector.broadcast %2 : vector<1x64xf32> to vector<8x64xf32>
    %420 = arith.mulf %418, %419 : vector<8x64xf32>
    %421 = arith.addf %417, %420 : vector<8x64xf32>
    %c0_46 = arith.constant 0 : index
    %c2624 = arith.constant 2624 : index
    %422 = vector.load %arg3[%c0_46, %c2624] : memref<8x4096xf32, #tpu.memory_space<vmem>>, vector<8x64xf32>
    tpu.vector_store %arg3[%c0_46, %c2624], %421 {strides = array<i32>} : memref<8x4096xf32, #tpu.memory_space<vmem>>, vector<8x64xf32>,
    %423 = vector.extract_strided_slice %0 {offsets = [0, 84], sizes = [8, 1], strides = [1, 1]} : vector<8x128xf32> to vector<8x1xf32>
    %424 = vector.extract_strided_slice %0 {offsets = [0, 85], sizes = [8, 1], strides = [1, 1]} : vector<8x128xf32> to vector<8x1xf32>
    %425 = vector.broadcast %423 : vector<8x1xf32> to vector<8x64xf32>
    %426 = vector.broadcast %1 : vector<1x64xf32> to vector<8x64xf32>
    %427 = arith.mulf %425, %426 : vector<8x64xf32>
    %428 = vector.broadcast %424 : vector<8x1xf32> to vector<8x64xf32>
    %429 = vector.broadcast %2 : vector<1x64xf32> to vector<8x64xf32>
    %430 = arith.mulf %428, %429 : vector<8x64xf32>
    %431 = arith.addf %427, %430 : vector<8x64xf32>
    %c0_47 = arith.constant 0 : index
    %c2688 = arith.constant 2688 : index
    %432 = vector.load %arg3[%c0_47, %c2688] : memref<8x4096xf32, #tpu.memory_space<vmem>>, vector<8x64xf32>
    tpu.vector_store %arg3[%c0_47, %c2688], %431 {strides = array<i32>} : memref<8x4096xf32, #tpu.memory_space<vmem>>, vector<8x64xf32>,
    %433 = vector.extract_strided_slice %0 {offsets = [0, 86], sizes = [8, 1], strides = [1, 1]} : vector<8x128xf32> to vector<8x1xf32>
    %434 = vector.extract_strided_slice %0 {offsets = [0, 87], sizes = [8, 1], strides = [1, 1]} : vector<8x128xf32> to vector<8x1xf32>
    %435 = vector.broadcast %433 : vector<8x1xf32> to vector<8x64xf32>
    %436 = vector.broadcast %1 : vector<1x64xf32> to vector<8x64xf32>
    %437 = arith.mulf %435, %436 : vector<8x64xf32>
    %438 = vector.broadcast %434 : vector<8x1xf32> to vector<8x64xf32>
    %439 = vector.broadcast %2 : vector<1x64xf32> to vector<8x64xf32>
    %440 = arith.mulf %438, %439 : vector<8x64xf32>
    %441 = arith.addf %437, %440 : vector<8x64xf32>
    %c0_48 = arith.constant 0 : index
    %c2752 = arith.constant 2752 : index
    %442 = vector.load %arg3[%c0_48, %c2752] : memref<8x4096xf32, #tpu.memory_space<vmem>>, vector<8x64xf32>
    tpu.vector_store %arg3[%c0_48, %c2752], %441 {strides = array<i32>} : memref<8x4096xf32, #tpu.memory_space<vmem>>, vector<8x64xf32>,
    %443 = vector.extract_strided_slice %0 {offsets = [0, 88], sizes = [8, 1], strides = [1, 1]} : vector<8x128xf32> to vector<8x1xf32>
    %444 = vector.extract_strided_slice %0 {offsets = [0, 89], sizes = [8, 1], strides = [1, 1]} : vector<8x128xf32> to vector<8x1xf32>
    %445 = vector.broadcast %443 : vector<8x1xf32> to vector<8x64xf32>
    %446 = vector.broadcast %1 : vector<1x64xf32> to vector<8x64xf32>
    %447 = arith.mulf %445, %446 : vector<8x64xf32>
    %448 = vector.broadcast %444 : vector<8x1xf32> to vector<8x64xf32>
    %449 = vector.broadcast %2 : vector<1x64xf32> to vector<8x64xf32>
    %450 = arith.mulf %448, %449 : vector<8x64xf32>
    %451 = arith.addf %447, %450 : vector<8x64xf32>
    %c0_49 = arith.constant 0 : index
    %c2816 = arith.constant 2816 : index
    %452 = vector.load %arg3[%c0_49, %c2816] : memref<8x4096xf32, #tpu.memory_space<vmem>>, vector<8x64xf32>
    tpu.vector_store %arg3[%c0_49, %c2816], %451 {strides = array<i32>} : memref<8x4096xf32, #tpu.memory_space<vmem>>, vector<8x64xf32>,
    %453 = vector.extract_strided_slice %0 {offsets = [0, 90], sizes = [8, 1], strides = [1, 1]} : vector<8x128xf32> to vector<8x1xf32>
    %454 = vector.extract_strided_slice %0 {offsets = [0, 91], sizes = [8, 1], strides = [1, 1]} : vector<8x128xf32> to vector<8x1xf32>
    %455 = vector.broadcast %453 : vector<8x1xf32> to vector<8x64xf32>
    %456 = vector.broadcast %1 : vector<1x64xf32> to vector<8x64xf32>
    %457 = arith.mulf %455, %456 : vector<8x64xf32>
    %458 = vector.broadcast %454 : vector<8x1xf32> to vector<8x64xf32>
    %459 = vector.broadcast %2 : vector<1x64xf32> to vector<8x64xf32>
    %460 = arith.mulf %458, %459 : vector<8x64xf32>
    %461 = arith.addf %457, %460 : vector<8x64xf32>
    %c0_50 = arith.constant 0 : index
    %c2880 = arith.constant 2880 : index
    %462 = vector.load %arg3[%c0_50, %c2880] : memref<8x4096xf32, #tpu.memory_space<vmem>>, vector<8x64xf32>
    tpu.vector_store %arg3[%c0_50, %c2880], %461 {strides = array<i32>} : memref<8x4096xf32, #tpu.memory_space<vmem>>, vector<8x64xf32>,
    %463 = vector.extract_strided_slice %0 {offsets = [0, 92], sizes = [8, 1], strides = [1, 1]} : vector<8x128xf32> to vector<8x1xf32>
    %464 = vector.extract_strided_slice %0 {offsets = [0, 93], sizes = [8, 1], strides = [1, 1]} : vector<8x128xf32> to vector<8x1xf32>
    %465 = vector.broadcast %463 : vector<8x1xf32> to vector<8x64xf32>
    %466 = vector.broadcast %1 : vector<1x64xf32> to vector<8x64xf32>
    %467 = arith.mulf %465, %466 : vector<8x64xf32>
    %468 = vector.broadcast %464 : vector<8x1xf32> to vector<8x64xf32>
    %469 = vector.broadcast %2 : vector<1x64xf32> to vector<8x64xf32>
    %470 = arith.mulf %468, %469 : vector<8x64xf32>
    %471 = arith.addf %467, %470 : vector<8x64xf32>
    %c0_51 = arith.constant 0 : index
    %c2944 = arith.constant 2944 : index
    %472 = vector.load %arg3[%c0_51, %c2944] : memref<8x4096xf32, #tpu.memory_space<vmem>>, vector<8x64xf32>
    tpu.vector_store %arg3[%c0_51, %c2944], %471 {strides = array<i32>} : memref<8x4096xf32, #tpu.memory_space<vmem>>, vector<8x64xf32>,
    %473 = vector.extract_strided_slice %0 {offsets = [0, 94], sizes = [8, 1], strides = [1, 1]} : vector<8x128xf32> to vector<8x1xf32>
    %474 = vector.extract_strided_slice %0 {offsets = [0, 95], sizes = [8, 1], strides = [1, 1]} : vector<8x128xf32> to vector<8x1xf32>
    %475 = vector.broadcast %473 : vector<8x1xf32> to vector<8x64xf32>
    %476 = vector.broadcast %1 : vector<1x64xf32> to vector<8x64xf32>
    %477 = arith.mulf %475, %476 : vector<8x64xf32>
    %478 = vector.broadcast %474 : vector<8x1xf32> to vector<8x64xf32>
    %479 = vector.broadcast %2 : vector<1x64xf32> to vector<8x64xf32>
    %480 = arith.mulf %478, %479 : vector<8x64xf32>
    %481 = arith.addf %477, %480 : vector<8x64xf32>
    %c0_52 = arith.constant 0 : index
    %c3008 = arith.constant 3008 : index
    %482 = vector.load %arg3[%c0_52, %c3008] : memref<8x4096xf32, #tpu.memory_space<vmem>>, vector<8x64xf32>
    tpu.vector_store %arg3[%c0_52, %c3008], %481 {strides = array<i32>} : memref<8x4096xf32, #tpu.memory_space<vmem>>, vector<8x64xf32>,
    %483 = vector.extract_strided_slice %0 {offsets = [0, 96], sizes = [8, 1], strides = [1, 1]} : vector<8x128xf32> to vector<8x1xf32>
    %484 = vector.extract_strided_slice %0 {offsets = [0, 97], sizes = [8, 1], strides = [1, 1]} : vector<8x128xf32> to vector<8x1xf32>
    %485 = vector.broadcast %483 : vector<8x1xf32> to vector<8x64xf32>
    %486 = vector.broadcast %1 : vector<1x64xf32> to vector<8x64xf32>
    %487 = arith.mulf %485, %486 : vector<8x64xf32>
    %488 = vector.broadcast %484 : vector<8x1xf32> to vector<8x64xf32>
    %489 = vector.broadcast %2 : vector<1x64xf32> to vector<8x64xf32>
    %490 = arith.mulf %488, %489 : vector<8x64xf32>
    %491 = arith.addf %487, %490 : vector<8x64xf32>
    %c0_53 = arith.constant 0 : index
    %c3072 = arith.constant 3072 : index
    %492 = vector.load %arg3[%c0_53, %c3072] : memref<8x4096xf32, #tpu.memory_space<vmem>>, vector<8x64xf32>
    tpu.vector_store %arg3[%c0_53, %c3072], %491 {strides = array<i32>} : memref<8x4096xf32, #tpu.memory_space<vmem>>, vector<8x64xf32>,
    %493 = vector.extract_strided_slice %0 {offsets = [0, 98], sizes = [8, 1], strides = [1, 1]} : vector<8x128xf32> to vector<8x1xf32>
    %494 = vector.extract_strided_slice %0 {offsets = [0, 99], sizes = [8, 1], strides = [1, 1]} : vector<8x128xf32> to vector<8x1xf32>
    %495 = vector.broadcast %493 : vector<8x1xf32> to vector<8x64xf32>
    %496 = vector.broadcast %1 : vector<1x64xf32> to vector<8x64xf32>
    %497 = arith.mulf %495, %496 : vector<8x64xf32>
    %498 = vector.broadcast %494 : vector<8x1xf32> to vector<8x64xf32>
    %499 = vector.broadcast %2 : vector<1x64xf32> to vector<8x64xf32>
    %500 = arith.mulf %498, %499 : vector<8x64xf32>
    %501 = arith.addf %497, %500 : vector<8x64xf32>
    %c0_54 = arith.constant 0 : index
    %c3136 = arith.constant 3136 : index
    %502 = vector.load %arg3[%c0_54, %c3136] : memref<8x4096xf32, #tpu.memory_space<vmem>>, vector<8x64xf32>
    tpu.vector_store %arg3[%c0_54, %c3136], %501 {strides = array<i32>} : memref<8x4096xf32, #tpu.memory_space<vmem>>, vector<8x64xf32>,
    %503 = vector.extract_strided_slice %0 {offsets = [0, 100], sizes = [8, 1], strides = [1, 1]} : vector<8x128xf32> to vector<8x1xf32>
    %504 = vector.extract_strided_slice %0 {offsets = [0, 101], sizes = [8, 1], strides = [1, 1]} : vector<8x128xf32> to vector<8x1xf32>
    %505 = vector.broadcast %503 : vector<8x1xf32> to vector<8x64xf32>
    %506 = vector.broadcast %1 : vector<1x64xf32> to vector<8x64xf32>
    %507 = arith.mulf %505, %506 : vector<8x64xf32>
    %508 = vector.broadcast %504 : vector<8x1xf32> to vector<8x64xf32>
    %509 = vector.broadcast %2 : vector<1x64xf32> to vector<8x64xf32>
    %510 = arith.mulf %508, %509 : vector<8x64xf32>
    %511 = arith.addf %507, %510 : vector<8x64xf32>
    %c0_55 = arith.constant 0 : index
    %c3200 = arith.constant 3200 : index
    %512 = vector.load %arg3[%c0_55, %c3200] : memref<8x4096xf32, #tpu.memory_space<vmem>>, vector<8x64xf32>
    tpu.vector_store %arg3[%c0_55, %c3200], %511 {strides = array<i32>} : memref<8x4096xf32, #tpu.memory_space<vmem>>, vector<8x64xf32>,
    %513 = vector.extract_strided_slice %0 {offsets = [0, 102], sizes = [8, 1], strides = [1, 1]} : vector<8x128xf32> to vector<8x1xf32>
    %514 = vector.extract_strided_slice %0 {offsets = [0, 103], sizes = [8, 1], strides = [1, 1]} : vector<8x128xf32> to vector<8x1xf32>
    %515 = vector.broadcast %513 : vector<8x1xf32> to vector<8x64xf32>
    %516 = vector.broadcast %1 : vector<1x64xf32> to vector<8x64xf32>
    %517 = arith.mulf %515, %516 : vector<8x64xf32>
    %518 = vector.broadcast %514 : vector<8x1xf32> to vector<8x64xf32>
    %519 = vector.broadcast %2 : vector<1x64xf32> to vector<8x64xf32>
    %520 = arith.mulf %518, %519 : vector<8x64xf32>
    %521 = arith.addf %517, %520 : vector<8x64xf32>
    %c0_56 = arith.constant 0 : index
    %c3264 = arith.constant 3264 : index
    %522 = vector.load %arg3[%c0_56, %c3264] : memref<8x4096xf32, #tpu.memory_space<vmem>>, vector<8x64xf32>
    tpu.vector_store %arg3[%c0_56, %c3264], %521 {strides = array<i32>} : memref<8x4096xf32, #tpu.memory_space<vmem>>, vector<8x64xf32>,
    %523 = vector.extract_strided_slice %0 {offsets = [0, 104], sizes = [8, 1], strides = [1, 1]} : vector<8x128xf32> to vector<8x1xf32>
    %524 = vector.extract_strided_slice %0 {offsets = [0, 105], sizes = [8, 1], strides = [1, 1]} : vector<8x128xf32> to vector<8x1xf32>
    %525 = vector.broadcast %523 : vector<8x1xf32> to vector<8x64xf32>
    %526 = vector.broadcast %1 : vector<1x64xf32> to vector<8x64xf32>
    %527 = arith.mulf %525, %526 : vector<8x64xf32>
    %528 = vector.broadcast %524 : vector<8x1xf32> to vector<8x64xf32>
    %529 = vector.broadcast %2 : vector<1x64xf32> to vector<8x64xf32>
    %530 = arith.mulf %528, %529 : vector<8x64xf32>
    %531 = arith.addf %527, %530 : vector<8x64xf32>
    %c0_57 = arith.constant 0 : index
    %c3328 = arith.constant 3328 : index
    %532 = vector.load %arg3[%c0_57, %c3328] : memref<8x4096xf32, #tpu.memory_space<vmem>>, vector<8x64xf32>
    tpu.vector_store %arg3[%c0_57, %c3328], %531 {strides = array<i32>} : memref<8x4096xf32, #tpu.memory_space<vmem>>, vector<8x64xf32>,
    %533 = vector.extract_strided_slice %0 {offsets = [0, 106], sizes = [8, 1], strides = [1, 1]} : vector<8x128xf32> to vector<8x1xf32>
    %534 = vector.extract_strided_slice %0 {offsets = [0, 107], sizes = [8, 1], strides = [1, 1]} : vector<8x128xf32> to vector<8x1xf32>
    %535 = vector.broadcast %533 : vector<8x1xf32> to vector<8x64xf32>
    %536 = vector.broadcast %1 : vector<1x64xf32> to vector<8x64xf32>
    %537 = arith.mulf %535, %536 : vector<8x64xf32>
    %538 = vector.broadcast %534 : vector<8x1xf32> to vector<8x64xf32>
    %539 = vector.broadcast %2 : vector<1x64xf32> to vector<8x64xf32>
    %540 = arith.mulf %538, %539 : vector<8x64xf32>
    %541 = arith.addf %537, %540 : vector<8x64xf32>
    %c0_58 = arith.constant 0 : index
    %c3392 = arith.constant 3392 : index
    %542 = vector.load %arg3[%c0_58, %c3392] : memref<8x4096xf32, #tpu.memory_space<vmem>>, vector<8x64xf32>
    tpu.vector_store %arg3[%c0_58, %c3392], %541 {strides = array<i32>} : memref<8x4096xf32, #tpu.memory_space<vmem>>, vector<8x64xf32>,
    %543 = vector.extract_strided_slice %0 {offsets = [0, 108], sizes = [8, 1], strides = [1, 1]} : vector<8x128xf32> to vector<8x1xf32>
    %544 = vector.extract_strided_slice %0 {offsets = [0, 109], sizes = [8, 1], strides = [1, 1]} : vector<8x128xf32> to vector<8x1xf32>
    %545 = vector.broadcast %543 : vector<8x1xf32> to vector<8x64xf32>
    %546 = vector.broadcast %1 : vector<1x64xf32> to vector<8x64xf32>
    %547 = arith.mulf %545, %546 : vector<8x64xf32>
    %548 = vector.broadcast %544 : vector<8x1xf32> to vector<8x64xf32>
    %549 = vector.broadcast %2 : vector<1x64xf32> to vector<8x64xf32>
    %550 = arith.mulf %548, %549 : vector<8x64xf32>
    %551 = arith.addf %547, %550 : vector<8x64xf32>
    %c0_59 = arith.constant 0 : index
    %c3456 = arith.constant 3456 : index
    %552 = vector.load %arg3[%c0_59, %c3456] : memref<8x4096xf32, #tpu.memory_space<vmem>>, vector<8x64xf32>
    tpu.vector_store %arg3[%c0_59, %c3456], %551 {strides = array<i32>} : memref<8x4096xf32, #tpu.memory_space<vmem>>, vector<8x64xf32>,
    %553 = vector.extract_strided_slice %0 {offsets = [0, 110], sizes = [8, 1], strides = [1, 1]} : vector<8x128xf32> to vector<8x1xf32>
    %554 = vector.extract_strided_slice %0 {offsets = [0, 111], sizes = [8, 1], strides = [1, 1]} : vector<8x128xf32> to vector<8x1xf32>
    %555 = vector.broadcast %553 : vector<8x1xf32> to vector<8x64xf32>
    %556 = vector.broadcast %1 : vector<1x64xf32> to vector<8x64xf32>
    %557 = arith.mulf %555, %556 : vector<8x64xf32>
    %558 = vector.broadcast %554 : vector<8x1xf32> to vector<8x64xf32>
    %559 = vector.broadcast %2 : vector<1x64xf32> to vector<8x64xf32>
    %560 = arith.mulf %558, %559 : vector<8x64xf32>
    %561 = arith.addf %557, %560 : vector<8x64xf32>
    %c0_60 = arith.constant 0 : index
    %c3520 = arith.constant 3520 : index
    %562 = vector.load %arg3[%c0_60, %c3520] : memref<8x4096xf32, #tpu.memory_space<vmem>>, vector<8x64xf32>
    tpu.vector_store %arg3[%c0_60, %c3520], %561 {strides = array<i32>} : memref<8x4096xf32, #tpu.memory_space<vmem>>, vector<8x64xf32>,
    %563 = vector.extract_strided_slice %0 {offsets = [0, 112], sizes = [8, 1], strides = [1, 1]} : vector<8x128xf32> to vector<8x1xf32>
    %564 = vector.extract_strided_slice %0 {offsets = [0, 113], sizes = [8, 1], strides = [1, 1]} : vector<8x128xf32> to vector<8x1xf32>
    %565 = vector.broadcast %563 : vector<8x1xf32> to vector<8x64xf32>
    %566 = vector.broadcast %1 : vector<1x64xf32> to vector<8x64xf32>
    %567 = arith.mulf %565, %566 : vector<8x64xf32>
    %568 = vector.broadcast %564 : vector<8x1xf32> to vector<8x64xf32>
    %569 = vector.broadcast %2 : vector<1x64xf32> to vector<8x64xf32>
    %570 = arith.mulf %568, %569 : vector<8x64xf32>
    %571 = arith.addf %567, %570 : vector<8x64xf32>
    %c0_61 = arith.constant 0 : index
    %c3584 = arith.constant 3584 : index
    %572 = vector.load %arg3[%c0_61, %c3584] : memref<8x4096xf32, #tpu.memory_space<vmem>>, vector<8x64xf32>
    tpu.vector_store %arg3[%c0_61, %c3584], %571 {strides = array<i32>} : memref<8x4096xf32, #tpu.memory_space<vmem>>, vector<8x64xf32>,
    %573 = vector.extract_strided_slice %0 {offsets = [0, 114], sizes = [8, 1], strides = [1, 1]} : vector<8x128xf32> to vector<8x1xf32>
    %574 = vector.extract_strided_slice %0 {offsets = [0, 115], sizes = [8, 1], strides = [1, 1]} : vector<8x128xf32> to vector<8x1xf32>
    %575 = vector.broadcast %573 : vector<8x1xf32> to vector<8x64xf32>
    %576 = vector.broadcast %1 : vector<1x64xf32> to vector<8x64xf32>
    %577 = arith.mulf %575, %576 : vector<8x64xf32>
    %578 = vector.broadcast %574 : vector<8x1xf32> to vector<8x64xf32>
    %579 = vector.broadcast %2 : vector<1x64xf32> to vector<8x64xf32>
    %580 = arith.mulf %578, %579 : vector<8x64xf32>
    %581 = arith.addf %577, %580 : vector<8x64xf32>
    %c0_62 = arith.constant 0 : index
    %c3648 = arith.constant 3648 : index
    %582 = vector.load %arg3[%c0_62, %c3648] : memref<8x4096xf32, #tpu.memory_space<vmem>>, vector<8x64xf32>
    tpu.vector_store %arg3[%c0_62, %c3648], %581 {strides = array<i32>} : memref<8x4096xf32, #tpu.memory_space<vmem>>, vector<8x64xf32>,
    %583 = vector.extract_strided_slice %0 {offsets = [0, 116], sizes = [8, 1], strides = [1, 1]} : vector<8x128xf32> to vector<8x1xf32>
    %584 = vector.extract_strided_slice %0 {offsets = [0, 117], sizes = [8, 1], strides = [1, 1]} : vector<8x128xf32> to vector<8x1xf32>
    %585 = vector.broadcast %583 : vector<8x1xf32> to vector<8x64xf32>
    %586 = vector.broadcast %1 : vector<1x64xf32> to vector<8x64xf32>
    %587 = arith.mulf %585, %586 : vector<8x64xf32>
    %588 = vector.broadcast %584 : vector<8x1xf32> to vector<8x64xf32>
    %589 = vector.broadcast %2 : vector<1x64xf32> to vector<8x64xf32>
    %590 = arith.mulf %588, %589 : vector<8x64xf32>
    %591 = arith.addf %587, %590 : vector<8x64xf32>
    %c0_63 = arith.constant 0 : index
    %c3712 = arith.constant 3712 : index
    %592 = vector.load %arg3[%c0_63, %c3712] : memref<8x4096xf32, #tpu.memory_space<vmem>>, vector<8x64xf32>
    tpu.vector_store %arg3[%c0_63, %c3712], %591 {strides = array<i32>} : memref<8x4096xf32, #tpu.memory_space<vmem>>, vector<8x64xf32>,
    %593 = vector.extract_strided_slice %0 {offsets = [0, 118], sizes = [8, 1], strides = [1, 1]} : vector<8x128xf32> to vector<8x1xf32>
    %594 = vector.extract_strided_slice %0 {offsets = [0, 119], sizes = [8, 1], strides = [1, 1]} : vector<8x128xf32> to vector<8x1xf32>
    %595 = vector.broadcast %593 : vector<8x1xf32> to vector<8x64xf32>
    %596 = vector.broadcast %1 : vector<1x64xf32> to vector<8x64xf32>
    %597 = arith.mulf %595, %596 : vector<8x64xf32>
    %598 = vector.broadcast %594 : vector<8x1xf32> to vector<8x64xf32>
    %599 = vector.broadcast %2 : vector<1x64xf32> to vector<8x64xf32>
    %600 = arith.mulf %598, %599 : vector<8x64xf32>
    %601 = arith.addf %597, %600 : vector<8x64xf32>
    %c0_64 = arith.constant 0 : index
    %c3776 = arith.constant 3776 : index
    %602 = vector.load %arg3[%c0_64, %c3776] : memref<8x4096xf32, #tpu.memory_space<vmem>>, vector<8x64xf32>
    tpu.vector_store %arg3[%c0_64, %c3776], %601 {strides = array<i32>} : memref<8x4096xf32, #tpu.memory_space<vmem>>, vector<8x64xf32>,
    %603 = vector.extract_strided_slice %0 {offsets = [0, 120], sizes = [8, 1], strides = [1, 1]} : vector<8x128xf32> to vector<8x1xf32>
    %604 = vector.extract_strided_slice %0 {offsets = [0, 121], sizes = [8, 1], strides = [1, 1]} : vector<8x128xf32> to vector<8x1xf32>
    %605 = vector.broadcast %603 : vector<8x1xf32> to vector<8x64xf32>
    %606 = vector.broadcast %1 : vector<1x64xf32> to vector<8x64xf32>
    %607 = arith.mulf %605, %606 : vector<8x64xf32>
    %608 = vector.broadcast %604 : vector<8x1xf32> to vector<8x64xf32>
    %609 = vector.broadcast %2 : vector<1x64xf32> to vector<8x64xf32>
    %610 = arith.mulf %608, %609 : vector<8x64xf32>
    %611 = arith.addf %607, %610 : vector<8x64xf32>
    %c0_65 = arith.constant 0 : index
    %c3840 = arith.constant 3840 : index
    %612 = vector.load %arg3[%c0_65, %c3840] : memref<8x4096xf32, #tpu.memory_space<vmem>>, vector<8x64xf32>
    tpu.vector_store %arg3[%c0_65, %c3840], %611 {strides = array<i32>} : memref<8x4096xf32, #tpu.memory_space<vmem>>, vector<8x64xf32>,
    %613 = vector.extract_strided_slice %0 {offsets = [0, 122], sizes = [8, 1], strides = [1, 1]} : vector<8x128xf32> to vector<8x1xf32>
    %614 = vector.extract_strided_slice %0 {offsets = [0, 123], sizes = [8, 1], strides = [1, 1]} : vector<8x128xf32> to vector<8x1xf32>
    %615 = vector.broadcast %613 : vector<8x1xf32> to vector<8x64xf32>
    %616 = vector.broadcast %1 : vector<1x64xf32> to vector<8x64xf32>
    %617 = arith.mulf %615, %616 : vector<8x64xf32>
    %618 = vector.broadcast %614 : vector<8x1xf32> to vector<8x64xf32>
    %619 = vector.broadcast %2 : vector<1x64xf32> to vector<8x64xf32>
    %620 = arith.mulf %618, %619 : vector<8x64xf32>
    %621 = arith.addf %617, %620 : vector<8x64xf32>
    %c0_66 = arith.constant 0 : index
    %c3904 = arith.constant 3904 : index
    %622 = vector.load %arg3[%c0_66, %c3904] : memref<8x4096xf32, #tpu.memory_space<vmem>>, vector<8x64xf32>
    tpu.vector_store %arg3[%c0_66, %c3904], %621 {strides = array<i32>} : memref<8x4096xf32, #tpu.memory_space<vmem>>, vector<8x64xf32>,
    %623 = vector.extract_strided_slice %0 {offsets = [0, 124], sizes = [8, 1], strides = [1, 1]} : vector<8x128xf32> to vector<8x1xf32>
    %624 = vector.extract_strided_slice %0 {offsets = [0, 125], sizes = [8, 1], strides = [1, 1]} : vector<8x128xf32> to vector<8x1xf32>
    %625 = vector.broadcast %623 : vector<8x1xf32> to vector<8x64xf32>
    %626 = vector.broadcast %1 : vector<1x64xf32> to vector<8x64xf32>
    %627 = arith.mulf %625, %626 : vector<8x64xf32>
    %628 = vector.broadcast %624 : vector<8x1xf32> to vector<8x64xf32>
    %629 = vector.broadcast %2 : vector<1x64xf32> to vector<8x64xf32>
    %630 = arith.mulf %628, %629 : vector<8x64xf32>
    %631 = arith.addf %627, %630 : vector<8x64xf32>
    %c0_67 = arith.constant 0 : index
    %c3968 = arith.constant 3968 : index
    %632 = vector.load %arg3[%c0_67, %c3968] : memref<8x4096xf32, #tpu.memory_space<vmem>>, vector<8x64xf32>
    tpu.vector_store %arg3[%c0_67, %c3968], %631 {strides = array<i32>} : memref<8x4096xf32, #tpu.memory_space<vmem>>, vector<8x64xf32>,
    %633 = vector.extract_strided_slice %0 {offsets = [0, 126], sizes = [8, 1], strides = [1, 1]} : vector<8x128xf32> to vector<8x1xf32>
    %634 = vector.extract_strided_slice %0 {offsets = [0, 127], sizes = [8, 1], strides = [1, 1]} : vector<8x128xf32> to vector<8x1xf32>
    %635 = vector.broadcast %633 : vector<8x1xf32> to vector<8x64xf32>
    %636 = vector.broadcast %1 : vector<1x64xf32> to vector<8x64xf32>
    %637 = arith.mulf %635, %636 : vector<8x64xf32>
    %638 = vector.broadcast %634 : vector<8x1xf32> to vector<8x64xf32>
    %639 = vector.broadcast %2 : vector<1x64xf32> to vector<8x64xf32>
    %640 = arith.mulf %638, %639 : vector<8x64xf32>
    %641 = arith.addf %637, %640 : vector<8x64xf32>
    %c0_68 = arith.constant 0 : index
    %c4032 = arith.constant 4032 : index
    %642 = vector.load %arg3[%c0_68, %c4032] : memref<8x4096xf32, #tpu.memory_space<vmem>>, vector<8x64xf32>
    tpu.vector_store %arg3[%c0_68, %c4032], %641 {strides = array<i32>} : memref<8x4096xf32, #tpu.memory_space<vmem>>, vector<8x64xf32>,
    return
  }
  func.func @transform_0(%arg0: i32) -> (i32, i32) {
    %c0_i32 = arith.constant 0 : i32
    %c0_i32_0 = arith.constant 0 : i32
    return %arg0, %c0_i32 : i32, i32
  }
  func.func @transform_1(%arg0: i32) -> (i32, i32) {
    %c0_i32 = arith.constant 0 : i32
    %c0_i32_0 = arith.constant 0 : i32
    %c0_i32_1 = arith.constant 0 : i32
    return %c0_i32, %c0_i32_0 : i32, i32
  }
  func.func @transform_2(%arg0: i32) -> (i32, i32) {
    %c0_i32 = arith.constant 0 : i32
    %c0_i32_0 = arith.constant 0 : i32
    return %arg0, %c0_i32 : i32, i32
  }
}

</mosaic_0001>

<bundles_post_ra>
// kernel: tpu_custom_call.1
= control target key start
LH: loop header
LB: loop body
LE: loop exit
PB: predicated region body
PF: predicated region fallthrough
CT: control target
= control target key end

     0   :  { %7 = vsyncpa [#allocation3], 0  ;;  %s1849_s0 = inlined_call_operand.hbm [shape: f32[8,128], index: 0, kind: input, shape index: {}]   ;;  %s1850_s1 = inlined_call_operand.vmem [shape: f32[2,64], index: 1, kind: input, shape index: {}]   ;;  %s1851_s2 = inlined_call_operand.hbm [shape: f32[8,4096], index: 2, kind: output, shape index: {}]  }
   0x1   :  { %8 = vsyncpa [#allocation4], 0  ;;  %s1262_s9 = smov [#allocation2]   ;;  %s1214_s13 = scalar_lea.hbm %s1849_s0, 128 }
   0x2   :  { %s15_s10 = sshll.u32 %s1262_s9, 4  ;;  %p1215_p0 = scmp.ne.s32.totalorder %s1849_s0, %s1214_s13  ;;  %s16_s10 = int_to_ptr.vmem [resolvable:$true] %s15_s10 }
   0x3   :  { %p1218_p1 = scmp.lt.u32.totalorder %s1214_s13, %s1849_s0 }
   0x5   :  { %p1220_p2 = pnand %p1218_p1, %p1215_p0 }
   0x7   :  { %1223 = shalt.err (!%p1220_p2)
}
   0x8   :  { %s1224_s18 = scalar_lea.vmem %s16_s10, 128  ;;  %p1229_p4 = scmp.lt.s32.totalorder %s16_s10, %s16_s10 }
   0x9   :  { %p1225_p3 = scmp.ne.s32.totalorder %s16_s10, %s1224_s18  ;;  %p1230_p5 = scmp.lt.s32.totalorder %s1224_s18, %s1224_s18 }
   0xb   :  { %p1231_p6 = por %p1230_p5, %p1229_p4 }
   0xd   :  { %p1232_p7 = pnand %p1231_p6, %p1225_p3 }
   0xf   :  { %1235 = shalt.err (!%p1232_p7)
}
  0x10   :  { %18 = dma.hbm_to_vmem [thread:$0]  %s1849_s0, 128, %s16_s10, [#allocation3]  }
  0x11   :  { %1258 = dma.done.wait [#allocation3], 128  }
  0x12   :  { %1259 = vsyncadd [#allocation3], 4294967168  ;;  %v1263_v0 = vmov 2   ;;  %v1264_v1 = vmov 0   ;;  %v1420_v2 = vld [vmem:[#allocation2] sm:$0xff]  ;;  %v1265_v3 = vmov 3  }
  0x13   :  { %1084 = vset.pattern.permute.xlu1 %v1263_v0  ;;  %1082 = vset.pattern.permute.xlu0 %v1264_v1  ;;  %v1266_v4 = vmov 1   ;;  %v1267_v5 = vmov 5   ;;  %v1268_v6 = vmov 4   ;;  %v1269_v7 = vmov 6   ;;  %v1465_v44 = vld [vmem:[%s1850_s1] ss:$0 sm:$0xff] }
  0x14   :  { %50 = vperm.xlu1 %1084, %v1420_v2   ;;  %29 = vperm.xlu0 %1082, %v1420_v2   ;;  %v1270_v8 = vmov 7   ;;  %v1271_v9 = vmov 8   ;;  %v1272_v10 = vmov 9   ;;  %v1273_v11 = vmov 10   ;;  %v1472_v46 = vld [vmem:[%s1850_s1 + $0x1] ss:$0 sm:$0xff] }
  0x15   :  { %v1274_v12 = vmov 13   ;;  %v1275_v13 = vmov 11   ;;  %v1276_v14 = vmov 17   ;;  %v1277_v15 = vmov 12   ;;  %s1310_s24 = smov 64  }
  0x16   :  { %v1278_v16 = vmov 21   ;;  %v1279_v17 = vmov 14   ;;  %v1280_v18 = vmov 25   ;;  %v1281_v19 = vmov 15  }
  0x17   :  { %v1282_v20 = vmov 29   ;;  %v1283_v21 = vmov 16   ;;  %v1284_v22 = vmov 33   ;;  %v1285_v23 = vmov 18  }
  0x18   :  { %1085 = vset.pattern.permute.xlu1 %v1265_v3  ;;  %1083 = vset.pattern.permute.xlu0 %v1266_v4  ;;  %v1286_v24 = vmov 37   ;;  %v1287_v25 = vmov 19   ;;  %v1288_v26 = vmov 41   ;;  %v1289_v27 = vmov 20  }
  0x19   :  { %55 = vperm.xlu1 %1085, %v1420_v2   ;;  %38 = vperm.xlu0 %1083, %v1420_v2   ;;  %v1290_v28 = vmov 45   ;;  %v1291_v29 = vmov 22   ;;  %v1292_v30 = vmov 23   ;;  %v1293_v31 = vmov 24  }
  0x1a   :  { %v1294_v32 = vmov 26   ;;  %v1295_v33 = vmov 27   ;;  %v1296_v34 = vmov 28   ;;  %v1297_v35 = vmov 30  }
  0x1b   :  { %v1298_v36 = vmov 31   ;;  %v1299_v37 = vmov 32   ;;  %v1300_v38 = vmov 34   ;;  %v1301_v39 = vmov 35  }
  0x1c   :  { %v1302_v40 = vmov 36   ;;  %v1303_v43 = vmov 38   ;;  %v1304_v50 = vmov 39   ;;  %vm47_vm0 = vcmask 523264  }
  0x1d   :  { %1087 = vset.pattern.permute.xlu1 %v1267_v5  ;;  %1086 = vset.pattern.permute.xlu0 %v1268_v6  ;;  %v1305_v56 = vmov 40   ;;  %v1306_v60 = vmov 42   ;;  %v1307_v1 = vmov 43   ;;  %v1308_v5 = vmov 44  }
  0x1e   :  { %72 = vperm.xlu1 %1087, %v1420_v2   ;;  %67 = vperm.xlu0 %1086, %v1420_v2   ;;  %vm64_vm1 = vcmask 1048064  }
  0x22   :  { %1088 = vset.pattern.permute.xlu1 %v1269_v7  ;;  %1089 = vset.pattern.permute.xlu0 %v1270_v8 }
  0x23   :  { %79 = vperm.xlu1 %1088, %v1420_v2   ;;  %84 = vperm.xlu0 %1089, %v1420_v2  }
  0x27   :  { %1090 = vset.pattern.permute.xlu1 %v1271_v9  ;;  %1091 = vset.pattern.permute.xlu0 %v1272_v10  ;;  %v1309_v10 = vmov 46  }
  0x28   :  { %95 = vperm.xlu1 %1090, %v1420_v2   ;;  %100 = vperm.xlu0 %1091, %v1420_v2  }
  0x2c   :  { %1092 = vset.pattern.permute.xlu1 %v1273_v11  ;;  %1095 = vset.pattern.permute.xlu0 %v1274_v12 }
  0x2d   :  { %107 = vperm.xlu1 %1092, %v1420_v2   ;;  %128 = vperm.xlu0 %1095, %v1420_v2  }
  0x31   :  { %1093 = vset.pattern.permute.xlu1 %v1275_v13  ;;  %1099 = vset.pattern.permute.xlu0 %v1276_v14 }
  0x32   :  { %112 = vperm.xlu1 %1093, %v1420_v2   ;;  %156 = vperm.xlu0 %1099, %v1420_v2  }
  0x36   :  { %1094 = vset.pattern.permute.xlu1 %v1277_v15  ;;  %1103 = vset.pattern.permute.xlu0 %v1278_v16  ;;  %v1311_v16 = vmov 47  }
  0x37   :  { %123 = vperm.xlu1 %1094, %v1420_v2   ;;  %184 = vperm.xlu0 %1103, %v1420_v2  }
  0x3b   :  { %1096 = vset.pattern.permute.xlu1 %v1279_v17  ;;  %1107 = vset.pattern.permute.xlu0 %v1280_v18 }
  0x3c   :  { %135 = vperm.xlu1 %1096, %v1420_v2   ;;  %212 = vperm.xlu0 %1107, %v1420_v2  }
  0x40   :  { %1097 = vset.pattern.permute.xlu1 %v1281_v19  ;;  %1111 = vset.pattern.permute.xlu0 %v1282_v20 }
  0x41   :  { %140 = vperm.xlu1 %1097, %v1420_v2   ;;  %240 = vperm.xlu0 %1111, %v1420_v2  }
  0x45   :  { %1098 = vset.pattern.permute.xlu1 %v1283_v21  ;;  %1115 = vset.pattern.permute.xlu0 %v1284_v22 }
  0x46   :  { %151 = vperm.xlu1 %1098, %v1420_v2   ;;  %268 = vperm.xlu0 %1115, %v1420_v2  }
  0x4a   :  { %1100 = vset.pattern.permute.xlu1 %v1285_v23  ;;  %1119 = vset.pattern.permute.xlu0 %v1286_v24  ;;  %v1312_v23 = vmov 48   ;;  %v1313_v24 = vmov 49  }
  0x4b   :  { %163 = vperm.xlu1 %1100, %v1420_v2   ;;  %296 = vperm.xlu0 %1119, %v1420_v2  }
  0x4f   :  { %1101 = vset.pattern.permute.xlu1 %v1287_v25  ;;  %1123 = vset.pattern.permute.xlu0 %v1288_v26 }
  0x50   :  { %168 = vperm.xlu1 %1101, %v1420_v2   ;;  %324 = vperm.xlu0 %1123, %v1420_v2  }
  0x54   :  { %1102 = vset.pattern.permute.xlu1 %v1289_v27  ;;  %1127 = vset.pattern.permute.xlu0 %v1290_v28 }
  0x55   :  { %179 = vperm.xlu1 %1102, %v1420_v2   ;;  %352 = vperm.xlu0 %1127, %v1420_v2  }
  0x59   :  { %1104 = vset.pattern.permute.xlu1 %v1291_v29  ;;  %1131 = vset.pattern.permute.xlu0 %v1313_v24 }
  0x5a   :  { %191 = vperm.xlu1 %1104, %v1420_v2  }
  0x5e   :  { %1105 = vset.pattern.permute.xlu1 %v1292_v30 }
  0x5f   :  { %196 = vperm.xlu1 %1105, %v1420_v2  }
  0x63   :  { %1106 = vset.pattern.permute.xlu1 %v1293_v31 }
  0x64   :  { %207 = vperm.xlu1 %1106, %v1420_v2  }
  0x68   :  { %1108 = vset.pattern.permute.xlu1 %v1294_v32 }
  0x69   :  { %219 = vperm.xlu1 %1108, %v1420_v2  }
  0x6d   :  { %1109 = vset.pattern.permute.xlu1 %v1295_v33 }
  0x6e   :  { %224 = vperm.xlu1 %1109, %v1420_v2  }
  0x72   :  { %1110 = vset.pattern.permute.xlu1 %v1296_v34 }
  0x73   :  { %235 = vperm.xlu1 %1110, %v1420_v2  }
  0x77   :  { %1112 = vset.pattern.permute.xlu1 %v1297_v35  ;;  %v1314_v35 = vmov 50  }
  0x78   :  { %247 = vperm.xlu1 %1112, %v1420_v2  }
  0x7c   :  { %1113 = vset.pattern.permute.xlu1 %v1298_v36 }
  0x7d   :  { %252 = vperm.xlu1 %1113, %v1420_v2  }
  0x81   :  { %1114 = vset.pattern.permute.xlu1 %v1299_v37  ;;  %v1315_v37 = vmov 51  }
  0x82   :  { %263 = vperm.xlu1 %1114, %v1420_v2  }
  0x86   :  { %1116 = vset.pattern.permute.xlu1 %v1300_v38 }
  0x87   :  { %275 = vperm.xlu1 %1116, %v1420_v2  }
  0x8b   :  { %1117 = vset.pattern.permute.xlu1 %v1301_v39 }
  0x8c   :  { %280 = vperm.xlu1 %1117, %v1420_v2  }
  0x90   :  { %1118 = vset.pattern.permute.xlu1 %v1302_v40 }
  0x91   :  { %291 = vperm.xlu1 %1118, %v1420_v2  }
  0x93   :  { %v51_v41 = vpop.permute.xlu1 %50  ;;  %v30_v42 = vpop.permute.xlu0 %29 }
  0x94   :  { %v36_v45 = vmul.f32 %v1465_v44, %v30_v42  ;;  %v53_v17 = vmul.f32 %v1465_v44, %v51_v41 }
  0x95   :  { %1120 = vset.pattern.permute.xlu1 %v1303_v43  ;;  %v1316_v43 = vmov 52  }
  0x96   :  { %303 = vperm.xlu1 %1120, %v1420_v2  }
  0x98   :  { %v56_v47 = vpop.permute.xlu1 %55  ;;  %v39_v48 = vpop.permute.xlu0 %38 }
  0x99   :  { %v45_v49 = vmul.f32 %v1472_v46, %v39_v48  ;;  %v58_v14 = vmul.f32 %v1472_v46, %v56_v47 }
  0x9a   :  { %1121 = vset.pattern.permute.xlu1 %v1304_v50  ;;  %v1317_v50 = vmov 54  }
  0x9b   :  { %v46_v51 = vadd.f32 %v45_v49, %v36_v45  ;;  %308 = vperm.xlu1 %1121, %v1420_v2   ;;  %v59_v19 = vadd.f32 %v58_v14, %v53_v17 }
  0x9d   :  { %v73_v52 = vpop.permute.xlu1 %72  ;;  %v68_v53 = vpop.permute.xlu0 %67  ;;  %48 = vst.msk [vmem:[#allocation5] sm:$0xff] %vm47_vm0, %v46_v51 }
  0x9e   :  { %v75_v54 = vmul.f32 %v1472_v46, %v73_v52  ;;  %v70_v55 = vmul.f32 %v1465_v44, %v68_v53  ;;  %v1318_v52 = vmov 55  }
  0x9f   :  { %1122 = vset.pattern.permute.xlu1 %v1305_v56 }
  0xa0   :  { %v76_v57 = vadd.f32 %v75_v54, %v70_v55  ;;  %319 = vperm.xlu1 %1122, %v1420_v2  }
  0xa2   :  { %v80_v58 = vpop.permute.xlu1 %79  ;;  %v85_v59 = vpop.permute.xlu0 %84  ;;  %77 = vst.msk [vmem:[#allocation5 + $0x8] sm:$0xff] %vm47_vm0, %v76_v57 }
  0xa3   :  { %v82_v20 = vmul.f32 %v1465_v44, %v80_v58  ;;  %v87_v21 = vmul.f32 %v1472_v46, %v85_v59  ;;  %v1319_v58 = vmov 56  }
  0xa4   :  { %1124 = vset.pattern.permute.xlu1 %v1306_v60 }
  0xa5   :  { %331 = vperm.xlu1 %1124, %v1420_v2   ;;  %v88_v25 = vadd.f32 %v87_v21, %v82_v20  ;;  %v1325_v21 = vmov 64  }
  0xa7   :  { %v96_v61 = vpop.permute.xlu1 %95  ;;  %v101_v62 = vpop.permute.xlu0 %100 }
  0xa8   :  { %v98_v63 = vmul.f32 %v1465_v44, %v96_v61  ;;  %v103_v0 = vmul.f32 %v1472_v46, %v101_v62 }
  0xa9   :  { %1125 = vset.pattern.permute.xlu1 %v1307_v1  ;;  %v1321_v1 = vmov 59  }
  0xaa   :  { %v104_v3 = vadd.f32 %v103_v0, %v98_v63  ;;  %336 = vperm.xlu1 %1125, %v1420_v2   ;;  %v1320_v63 = vmov 58  }
  0xac   :  { %v108_v4 = vpop.permute.xlu1 %107  ;;  %105 = vst.msk [vmem:[#allocation5 + $0x10] sm:$0xff] %vm47_vm0, %v104_v3  ;;  %v129_v9 = vpop.permute.xlu0 %128 }
  0xad   :  { %v110_v7 = vmul.f32 %v1465_v44, %v108_v4  ;;  %v131_v12 = vmul.f32 %v1472_v46, %v129_v9 }
  0xae   :  { %1126 = vset.pattern.permute.xlu1 %v1308_v5 }
  0xaf   :  { %347 = vperm.xlu1 %1126, %v1420_v2  }
  0xb1   :  { %v113_v6 = vpop.permute.xlu1 %112  ;;  %v157_v29 = vpop.permute.xlu0 %156 }
  0xb2   :  { %v115_v8 = vmul.f32 %v1472_v46, %v113_v6  ;;  %v159_v31 = vmul.f32 %v1472_v46, %v157_v29 }
  0xb3   :  { %1128 = vset.pattern.permute.xlu1 %v1309_v10 }
  0xb4   :  { %v116_v11 = vadd.f32 %v115_v8, %v110_v7  ;;  %359 = vperm.xlu1 %1128, %v1420_v2   ;;  %v1322_v8 = vmov 60  }
  0xb6   :  { %v124_v13 = vpop.permute.xlu1 %123  ;;  %118 = vrot.lane.b32.xlu0 %v116_v11, %s1310_s24  ;;  %v185_v41 = vpop.permute.xlu0 %184 }
  0xb7   :  { %v126_v15 = vmul.f32 %v1465_v44, %v124_v13  ;;  %v187_v45 = vmul.f32 %v1472_v46, %v185_v41  ;;  %v1323_v13 = vmov 62   ;;  %v1330_v41 = vmov 71  }
  0xb8   :  { %1129 = vset.pattern.permute.xlu1 %v1311_v16 }
  0xb9   :  { %v132_v18 = vadd.f32 %v131_v12, %v126_v15  ;;  %364 = vperm.xlu1 %1129, %v1420_v2   ;;  %v1324_v15 = vmov 63  }
  0xbb   :  { %v136_v22 = vpop.permute.xlu1 %135  ;;  %133 = vst.msk [vmem:[#allocation5 + $0x18] sm:$0xff] %vm47_vm0, %v132_v18  ;;  %v213_v56 = vpop.permute.xlu0 %212 }
  0xbc   :  { %v138_v27 = vmul.f32 %v1465_v44, %v136_v22  ;;  %v215_v59 = vmul.f32 %v1472_v46, %v213_v56 }
  0xbd   :  { %61 = vrot.lane.b32.xlu1 %v59_v19, %s1310_s24 }
  0xbe   :  { %1130 = vset.pattern.permute.xlu1 %v1312_v23 }
  0xc0   :  { %v141_v26 = vpop.permute.xlu1 %140  ;;  %v241_v6 = vpop.permute.xlu0 %240 }
  0xc1   :  { %v143_v28 = vmul.f32 %v1472_v46, %v141_v26  ;;  %90 = vrot.lane.b32.xlu1 %v88_v25, %s1310_s24  ;;  %v243_v9 = vmul.f32 %v1472_v46, %v241_v6  ;;  %v1326_v26 = vmov 66  }
  0xc3   :  { %v144_v30 = vadd.f32 %v143_v28, %v138_v27  ;;  %v1327_v28 = vmov 67  }
  0xc5   :  { %v152_v32 = vpop.permute.xlu1 %151  ;;  %146 = vrot.lane.b32.xlu0 %v144_v30, %s1310_s24  ;;  %375 = vperm.xlu1 %1130, %v1420_v2   ;;  %v269_v19 = vpop.permute.xlu0 %268 }
  0xc6   :  { %v154_v33 = vmul.f32 %v1465_v44, %v152_v32  ;;  %v271_v22 = vmul.f32 %v1472_v46, %v269_v19  ;;  %v1340_v19 = vmov 83  }
  0xc8   :  { %v160_v34 = vadd.f32 %v159_v31, %v154_v33 }
  0xc9   :  { %1132 = vset.pattern.permute.xlu1 %v1314_v35 }
  0xca   :  { %v164_v36 = vpop.permute.xlu1 %163  ;;  %387 = vperm.xlu1 %1132, %v1420_v2   ;;  %161 = vst.msk [vmem:[#allocation5 + $0x20] sm:$0xff] %vm47_vm0, %v160_v34  ;;  %v297_v32 = vpop.permute.xlu0 %296  ;;  %v1328_v34 = vmov 68  }
  0xcb   :  { %v166_v39 = vmul.f32 %v1465_v44, %v164_v36  ;;  %v299_v35 = vmul.f32 %v1472_v46, %v297_v32  ;;  %v1344_v32 = vmov 88  }
  0xce   :  { %1133 = vset.pattern.permute.xlu1 %v1315_v37 }
  0xcf   :  { %v169_v38 = vpop.permute.xlu1 %168  ;;  %392 = vperm.xlu1 %1133, %v1420_v2  }
  0xd0   :  { %v171_v40 = vmul.f32 %v1472_v46, %v169_v38 }
  0xd2   :  { %v172_v42 = vadd.f32 %v171_v40, %v166_v39  ;;  %v1329_v39 = vmov 70  }
  0xd3   :  { %1134 = vset.pattern.permute.xlu1 %v1316_v43 }
  0xd4   :  { %v180_v47 = vpop.permute.xlu1 %179  ;;  %174 = vrot.lane.b32.xlu0 %v172_v42, %s1310_s24  ;;  %403 = vperm.xlu1 %1134, %v1420_v2  }
  0xd5   :  { %v182_v48 = vmul.f32 %v1465_v44, %v180_v47  ;;  %v325_v47 = vpop.permute.xlu0 %324 }
  0xd7   :  { %v188_v49 = vadd.f32 %v187_v45, %v182_v48 }
  0xd8   :  { %1136 = vset.pattern.permute.xlu1 %v1317_v50  ;;  %v327_v50 = vmul.f32 %v1472_v46, %v325_v47 }
  0xd9   :  { %v192_v51 = vpop.permute.xlu1 %191  ;;  %415 = vperm.xlu1 %1136, %v1420_v2   ;;  %189 = vst.msk [vmem:[#allocation5 + $0x28] sm:$0xff] %vm47_vm0, %v188_v49  ;;  %v1331_v49 = vmov 72  }
  0xda   :  { %v194_v54 = vmul.f32 %v1465_v44, %v192_v51 }
  0xdd   :  { %1137 = vset.pattern.permute.xlu1 %v1318_v52 }
  0xde   :  { %v197_v53 = vpop.permute.xlu1 %196  ;;  %420 = vperm.xlu1 %1137, %v1420_v2  }
  0xdf   :  { %v199_v55 = vmul.f32 %v1472_v46, %v197_v53 }
  0xe1   :  { %v200_v57 = vadd.f32 %v199_v55, %v194_v54  ;;  %v353_v54 = vpop.permute.xlu0 %352  ;;  %v1332_v55 = vmov 74  }
  0xe2   :  { %1138 = vset.pattern.permute.xlu1 %v1319_v58 }
  0xe3   :  { %v208_v60 = vpop.permute.xlu1 %207  ;;  %202 = vrot.lane.b32.xlu0 %v200_v57, %s1310_s24  ;;  %431 = vperm.xlu1 %1138, %v1420_v2   ;;  %v1333_v57 = vmov 75  }
  0xe4   :  { %v210_v61 = vmul.f32 %v1465_v44, %v208_v60 }
  0xe6   :  { %v216_v62 = vadd.f32 %v215_v59, %v210_v61 }
  0xe7   :  { %1140 = vset.pattern.permute.xlu1 %v1320_v63  ;;  %v355_v63 = vmul.f32 %v1472_v46, %v353_v54 }
  0xe8   :  { %v220_v0 = vpop.permute.xlu1 %219  ;;  %443 = vperm.xlu1 %1140, %v1420_v2   ;;  %217 = vst.msk [vmem:[#allocation5 + $0x30] sm:$0xff] %vm47_vm0, %v216_v62 }
  0xe9   :  { %v222_v4 = vmul.f32 %v1465_v44, %v220_v0  ;;  %v1334_v0 = vmov 76  }
  0xec   :  { %1141 = vset.pattern.permute.xlu1 %v1321_v1 }
  0xed   :  { %v225_v3 = vpop.permute.xlu1 %224  ;;  %448 = vperm.xlu1 %1141, %v1420_v2  }
  0xee   :  { %v227_v5 = vmul.f32 %v1472_v46, %v225_v3 }
  0xf0   :  { %v228_v7 = vadd.f32 %v227_v5, %v222_v4  ;;  %v1335_v5 = vmov 78  }
  0xf1   :  { %1142 = vset.pattern.permute.xlu1 %v1322_v8 }
  0xf2   :  { %v236_v10 = vpop.permute.xlu1 %235  ;;  %230 = vrot.lane.b32.xlu0 %v228_v7, %s1310_s24  ;;  %459 = vperm.xlu1 %1142, %v1420_v2   ;;  %v1336_v7 = vmov 79  }
  0xf3   :  { %v238_v11 = vmul.f32 %v1465_v44, %v236_v10 }
  0xf5   :  { %v244_v12 = vadd.f32 %v243_v9, %v238_v11 }
  0xf6   :  { %1144 = vset.pattern.permute.xlu1 %v1323_v13 }
  0xf7   :  { %v248_v14 = vpop.permute.xlu1 %247  ;;  %471 = vperm.xlu1 %1144, %v1420_v2   ;;  %245 = vst.msk [vmem:[#allocation5 + $0x38] sm:$0xff] %vm47_vm0, %v244_v12 }
  0xf8   :  { %v250_v17 = vmul.f32 %v1465_v44, %v248_v14  ;;  %v1337_v14 = vmov 80  }
  0xfb   :  { %1145 = vset.pattern.permute.xlu1 %v1324_v15 }
  0xfc   :  { %v253_v16 = vpop.permute.xlu1 %252  ;;  %476 = vperm.xlu1 %1145, %v1420_v2  }
  0xfd   :  { %v255_v18 = vmul.f32 %v1472_v46, %v253_v16  ;;  %v1338_v16 = vmov 82  }
  0xff   :  { %v256_v20 = vadd.f32 %v255_v18, %v250_v17  ;;  %v1339_v18 = vmov 53  }
 0x100   :  { %1146 = vset.pattern.permute.xlu1 %v1325_v21 }
 0x101   :  { %v264_v23 = vpop.permute.xlu1 %263  ;;  %258 = vrot.lane.b32.xlu0 %v256_v20, %s1310_s24  ;;  %487 = vperm.xlu1 %1146, %v1420_v2  }
 0x102   :  { %v266_v24 = vmul.f32 %v1465_v44, %v264_v23 }
 0x104   :  { %v272_v25 = vadd.f32 %v271_v22, %v266_v24  ;;  %v1341_v22 = vmov 84  }
 0x105   :  { %1148 = vset.pattern.permute.xlu1 %v1326_v26  ;;  %v1342_v26 = vmov 86  }
 0x106   :  { %v276_v27 = vpop.permute.xlu1 %275  ;;  %499 = vperm.xlu1 %1148, %v1420_v2   ;;  %273 = vst.msk [vmem:[#allocation5 + $0x40] sm:$0xff] %vm47_vm0, %v272_v25 }
 0x107   :  { %v278_v30 = vmul.f32 %v1465_v44, %v276_v27 }
 0x10a   :  { %1149 = vset.pattern.permute.xlu1 %v1327_v28 }
 0x10b   :  { %v281_v29 = vpop.permute.xlu1 %280  ;;  %504 = vperm.xlu1 %1149, %v1420_v2  }
 0x10c   :  { %v283_v31 = vmul.f32 %v1472_v46, %v281_v29  ;;  %v1343_v29 = vmov 87  }
 0x10e   :  { %v284_v33 = vadd.f32 %v283_v31, %v278_v30 }
 0x10f   :  { %1150 = vset.pattern.permute.xlu1 %v1328_v34 }
 0x110   :  { %v292_v36 = vpop.permute.xlu1 %291  ;;  %286 = vrot.lane.b32.xlu0 %v284_v33, %s1310_s24  ;;  %515 = vperm.xlu1 %1150, %v1420_v2   ;;  %v1345_v33 = vmov 57  }
 0x111   :  { %v294_v37 = vmul.f32 %v1465_v44, %v292_v36 }
 0x113   :  { %v300_v38 = vadd.f32 %v299_v35, %v294_v37  ;;  %v1346_v37 = vmov 90  }
 0x114   :  { %1152 = vset.pattern.permute.xlu1 %v1329_v39 }
 0x115   :  { %v304_v40 = vpop.permute.xlu1 %303  ;;  %527 = vperm.xlu1 %1152, %v1420_v2   ;;  %301 = vst.msk [vmem:[#allocation5 + $0x48] sm:$0xff] %vm47_vm0, %v300_v38 }
 0x116   :  { %v306_v43 = vmul.f32 %v1465_v44, %v304_v40  ;;  %v1347_v40 = vmov 91  }
 0x119   :  { %1153 = vset.pattern.permute.xlu1 %v1330_v41 }
 0x11a   :  { %v309_v42 = vpop.permute.xlu1 %308  ;;  %532 = vperm.xlu1 %1153, %v1420_v2  }
 0x11b   :  { %v311_v45 = vmul.f32 %v1472_v46, %v309_v42 }
 0x11d   :  { %v312_v48 = vadd.f32 %v311_v45, %v306_v43  ;;  %v1348_v43 = vmov 92   ;;  %v1349_v45 = vmov 61  }
 0x11e   :  { %1154 = vset.pattern.permute.xlu1 %v1331_v49 }
 0x11f   :  { %v320_v51 = vpop.permute.xlu1 %319  ;;  %314 = vrot.lane.b32.xlu0 %v312_v48, %s1310_s24  ;;  %543 = vperm.xlu1 %1154, %v1420_v2  }
 0x120   :  { %v322_v52 = vmul.f32 %v1465_v44, %v320_v51 }
 0x122   :  { %v328_v53 = vadd.f32 %v327_v50, %v322_v52  ;;  %v1350_v50 = vmov 94  }
 0x123   :  { %1156 = vset.pattern.permute.xlu1 %v1332_v55 }
 0x124   :  { %v332_v56 = vpop.permute.xlu1 %331  ;;  %555 = vperm.xlu1 %1156, %v1420_v2   ;;  %329 = vst.msk [vmem:[#allocation5 + $0x50] sm:$0xff] %vm47_vm0, %v328_v53  ;;  %v1351_v53 = vmov 95  }
 0x125   :  { %v334_v60 = vmul.f32 %v1465_v44, %v332_v56  ;;  %v1352_v56 = vmov 96  }
 0x128   :  { %1157 = vset.pattern.permute.xlu1 %v1333_v57  ;;  %v119_v58 = vpop.permute.xlu0 %118  ;;  %v1353_v57 = vmov 65  }
 0x129   :  { %121 = vst.msk [vmem:[#allocation5 + $0x10] sm:$0xff] %vm64_vm1, %v119_v58  ;;  %v337_v59 = vpop.permute.xlu1 %336  ;;  %560 = vperm.xlu1 %1157, %v1420_v2  }
 0x12a   :  { %v339_v61 = vmul.f32 %v1472_v46, %v337_v59 }
 0x12c   :  { %v340_v62 = vadd.f32 %v339_v61, %v334_v60  ;;  %v1354_v61 = vmov 98  }
 0x12d   :  { %1158 = vset.pattern.permute.xlu1 %v1334_v0 }
 0x12e   :  { %v348_v1 = vpop.permute.xlu1 %347  ;;  %342 = vrot.lane.b32.xlu0 %v340_v62, %s1310_s24  ;;  %571 = vperm.xlu1 %1158, %v1420_v2  }
 0x12f   :  { %v350_v3 = vmul.f32 %v1465_v44, %v348_v1  ;;  %v1355_v1 = vmov 99  }
 0x131   :  { %v356_v4 = vadd.f32 %v355_v63, %v350_v3 }
 0x132   :  { %1160 = vset.pattern.permute.xlu1 %v1335_v5  ;;  %v1357_v5 = vmov 69  }
 0x133   :  { %357 = vst.msk [vmem:[#allocation5 + $0x58] sm:$0xff] %vm47_vm0, %v356_v4  ;;  %v360_v6 = vpop.permute.xlu1 %359  ;;  %583 = vperm.xlu1 %1160, %v1420_v2   ;;  %v1356_v4 = vmov 103  }
 0x134   :  { %v362_v10 = vmul.f32 %v1465_v44, %v360_v6 }
 0x137   :  { %1161 = vset.pattern.permute.xlu1 %v1336_v7  ;;  %v147_v8 = vpop.permute.xlu0 %146 }
 0x138   :  { %149 = vst.msk [vmem:[#allocation5 + $0x18] sm:$0xff] %vm64_vm1, %v147_v8  ;;  %v365_v9 = vpop.permute.xlu1 %364  ;;  %588 = vperm.xlu1 %1161, %v1420_v2  }
 0x139   :  { %v367_v11 = vmul.f32 %v1472_v46, %v365_v9  ;;  %v1358_v9 = vmov 106  }
 0x13b   :  { %v368_v12 = vadd.f32 %v367_v11, %v362_v10 }
 0x13c   :  { %v62_v13 = vpop.permute.xlu1 %61  ;;  %1162 = vset.pattern.permute.xlu1 %v1337_v14 }
 0x13d   :  { %65 = vst.msk [vmem:[#allocation5] sm:$0xff] %vm64_vm1, %v62_v13  ;;  %370 = vrot.lane.b32.xlu0 %v368_v12, %s1310_s24  ;;  %599 = vperm.xlu1 %1162, %v1420_v2   ;;  %v1359_v13 = vmov 110  }
 0x140   :  { %v91_v15 = vpop.permute.xlu1 %90 }
 0x141   :  { %93 = vst.msk [vmem:[#allocation5 + $0x8] sm:$0xff] %vm64_vm1, %v91_v15  ;;  %380 = vperm.xlu0 %1131, %v1420_v2   ;;  %1164 = vset.pattern.permute.xlu1 %v1338_v16  ;;  %v1360_v15 = vmov 111   ;;  %v1361_v16 = vmov 73  }
 0x142   :  { %611 = vperm.xlu1 %1164, %v1420_v2  }
 0x144   :  { %v1583_v17 = vpop.permute.xlu1 %375 }
 0x145   :  { %1135 = vset.pattern.permute.xlu0 %v1339_v18 }
 0x146   :  { %1165 = vset.pattern.permute.xlu1 %v1340_v19  ;;  %v175_v20 = vpop.permute.xlu0 %174 }
 0x147   :  { %177 = vst.msk [vmem:[#allocation5 + $0x20] sm:$0xff] %vm64_vm1, %v175_v20  ;;  %616 = vperm.xlu1 %1165, %v1420_v2  }
 0x149   :  { %v388_v21 = vpop.permute.xlu1 %387 }
 0x14a   :  { %v390_v24 = vmul.f32 %v1465_v44, %v388_v21  ;;  %v1362_v21 = vmov 115  }
 0x14b   :  { %1166 = vset.pattern.permute.xlu1 %v1341_v22 }
 0x14c   :  { %627 = vperm.xlu1 %1166, %v1420_v2  }
 0x14e   :  { %v393_v23 = vpop.permute.xlu1 %392 }
 0x14f   :  { %v395_v25 = vmul.f32 %v1472_v46, %v393_v23 }
 0x150   :  { %1168 = vset.pattern.permute.xlu1 %v1342_v26 }
 0x151   :  { %v396_v27 = vadd.f32 %v395_v25, %v390_v24  ;;  %639 = vperm.xlu1 %1168, %v1420_v2   ;;  %v1363_v25 = vmov 118  }
 0x153   :  { %398 = vrot.lane.b32.xlu0 %v396_v27, %s1310_s24  ;;  %v1592_v28 = vpop.permute.xlu1 %403  ;;  %v1364_v27 = vmov 122  }
 0x155   :  { %1169 = vset.pattern.permute.xlu1 %v1343_v29  ;;  %v203_v30 = vpop.permute.xlu0 %202  ;;  %v1365_v29 = vmov 77  }
 0x156   :  { %205 = vst.msk [vmem:[#allocation5 + $0x28] sm:$0xff] %vm64_vm1, %v203_v30  ;;  %644 = vperm.xlu1 %1169, %v1420_v2   ;;  %v1647_v30 = vld [vmem:[#allocation2] sm:$0xff] }
 0x157   :  { %408 = vperm.xlu0 %1135, %v1420_v2  }
 0x158   :  { %v416_v31 = vpop.permute.xlu1 %415 }
 0x159   :  { %v418_v35 = vmul.f32 %v1465_v44, %v416_v31 }
 0x15a   :  { %1170 = vset.pattern.permute.xlu1 %v1344_v32 }
 0x15b   :  { %655 = vperm.xlu1 %1170, %v1420_v2   ;;  %1139 = vset.pattern.permute.xlu0 %v1345_v33 }
 0x15d   :  { %v421_v34 = vpop.permute.xlu1 %420 }
 0x15e   :  { %v423_v36 = vmul.f32 %v1472_v46, %v421_v34  ;;  %v1366_v34 = vmov 123  }
 0x15f   :  { %1172 = vset.pattern.permute.xlu1 %v1346_v37  ;;  %v1367_v37 = vmov 127  }
 0x160   :  { %v424_v38 = vadd.f32 %v423_v36, %v418_v35  ;;  %667 = vperm.xlu1 %1172, %v1420_v2  }
 0x162   :  { %426 = vrot.lane.b32.xlu0 %v424_v38, %s1310_s24  ;;  %v1602_v39 = vpop.permute.xlu1 %431 }
 0x164   :  { %1173 = vset.pattern.permute.xlu1 %v1347_v40  ;;  %v231_v41 = vpop.permute.xlu0 %230  ;;  %v1368_v40 = vmov 81  }
 0x165   :  { %233 = vst.msk [vmem:[#allocation5 + $0x30] sm:$0xff] %vm64_vm1, %v231_v41  ;;  %672 = vperm.xlu1 %1173, %v1420_v2  }
 0x166   :  { %436 = vperm.xlu0 %1139, %v1420_v2  }
 0x167   :  { %v444_v42 = vpop.permute.xlu1 %443 }
 0x168   :  { %v446_v48 = vmul.f32 %v1465_v44, %v444_v42 }
 0x169   :  { %1174 = vset.pattern.permute.xlu1 %v1348_v43 }
 0x16a   :  { %683 = vperm.xlu1 %1174, %v1420_v2   ;;  %1143 = vset.pattern.permute.xlu0 %v1349_v45 }
 0x16c   :  { %v449_v47 = vpop.permute.xlu1 %448 }
 0x16d   :  { %v451_v49 = vmul.f32 %v1472_v46, %v449_v47 }
 0x16e   :  { %1176 = vset.pattern.permute.xlu1 %v1350_v50 }
 0x16f   :  { %v452_v51 = vadd.f32 %v451_v49, %v446_v48  ;;  %695 = vperm.xlu1 %1176, %v1420_v2   ;;  %v378_v49 = vmul.f32 %v1465_v44, %v1583_v17 }
 0x171   :  { %454 = vrot.lane.b32.xlu0 %v452_v51, %s1310_s24  ;;  %v1612_v52 = vpop.permute.xlu1 %459 }
 0x173   :  { %1177 = vset.pattern.permute.xlu1 %v1351_v53  ;;  %v259_v54 = vpop.permute.xlu0 %258 }
 0x174   :  { %261 = vst.msk [vmem:[#allocation5 + $0x38] sm:$0xff] %vm64_vm1, %v259_v54  ;;  %700 = vperm.xlu1 %1177, %v1420_v2   ;;  %v1369_v54 = vmov 85  }
 0x175   :  { %464 = vperm.xlu0 %1143, %v1420_v2  }
 0x176   :  { %v472_v55 = vpop.permute.xlu1 %471 }
 0x177   :  { %v474_v59 = vmul.f32 %v1465_v44, %v472_v55 }
 0x178   :  { %1178 = vset.pattern.permute.xlu1 %v1352_v56 }
 0x179   :  { %1147 = vset.pattern.permute.xlu0 %v1353_v57  ;;  %711 = vperm.xlu1 %1178, %v1420_v2   ;;  %v1370_v57 = vmov 101  }
 0x17b   :  { %v477_v58 = vpop.permute.xlu1 %476 }
 0x17c   :  { %v479_v60 = vmul.f32 %v1472_v46, %v477_v58 }
 0x17d   :  { %1180 = vset.pattern.permute.xlu1 %v1354_v61 }
 0x17e   :  { %v480_v62 = vadd.f32 %v479_v60, %v474_v59  ;;  %723 = vperm.xlu1 %1180, %v1420_v2  }
 0x180   :  { %482 = vrot.lane.b32.xlu0 %v480_v62, %s1310_s24  ;;  %v1622_v63 = vpop.permute.xlu1 %487  ;;  %v1371_v62 = vmov 89  }
 0x182   :  { %v287_v0 = vpop.permute.xlu0 %286  ;;  %1181 = vset.pattern.permute.xlu1 %v1355_v1 }
 0x183   :  { %289 = vst.msk [vmem:[#allocation5 + $0x40] sm:$0xff] %vm64_vm1, %v287_v0  ;;  %728 = vperm.xlu1 %1181, %v1420_v2  }
 0x184   :  { %492 = vperm.xlu0 %1147, %v1420_v2  }
 0x185   :  { %v500_v3 = vpop.permute.xlu1 %499 }
 0x186   :  { %v502_v7 = vmul.f32 %v1465_v44, %v500_v3 }
 0x187   :  { %1183 = vset.pattern.permute.xlu1 %v1356_v4 }
 0x188   :  { %1151 = vset.pattern.permute.xlu0 %v1357_v5  ;;  %756 = vperm.xlu1 %1183, %v1420_v2   ;;  %v406_v5 = vmul.f32 %v1465_v44, %v1592_v28 }
 0x18a   :  { %v505_v6 = vpop.permute.xlu1 %504 }
 0x18b   :  { %v507_v8 = vmul.f32 %v1472_v46, %v505_v6 }
 0x18c   :  { %1184 = vset.pattern.permute.xlu1 %v1358_v9 }
 0x18d   :  { %v508_v10 = vadd.f32 %v507_v8, %v502_v7  ;;  %779 = vperm.xlu1 %1184, %v1420_v2  }
 0x18f   :  { %510 = vrot.lane.b32.xlu0 %v508_v10, %s1310_s24  ;;  %v1632_v11 = vpop.permute.xlu1 %515 }
 0x191   :  { %v315_v12 = vpop.permute.xlu0 %314  ;;  %1186 = vset.pattern.permute.xlu1 %v1359_v13  ;;  %v1372_v13 = vmov 93  }
 0x192   :  { %317 = vst.msk [vmem:[#allocation5 + $0x48] sm:$0xff] %vm64_vm1, %v315_v12  ;;  %807 = vperm.xlu1 %1186, %v1420_v2  }
 0x193   :  { %520 = vperm.xlu0 %1151, %v1420_v2  }
 0x194   :  { %v528_v14 = vpop.permute.xlu1 %527 }
 0x195   :  { %v530_v19 = vmul.f32 %v1465_v44, %v528_v14 }
 0x196   :  { %1187 = vset.pattern.permute.xlu1 %v1360_v15 }
 0x197   :  { %1155 = vset.pattern.permute.xlu0 %v1361_v16  ;;  %812 = vperm.xlu1 %1187, %v1420_v2  }
 0x199   :  { %v533_v18 = vpop.permute.xlu1 %532 }
 0x19a   :  { %v535_v20 = vmul.f32 %v1472_v46, %v533_v18  ;;  %v434_v18 = vmul.f32 %v1465_v44, %v1602_v39 }
 0x19b   :  { %1189 = vset.pattern.permute.xlu1 %v1362_v21 }
 0x19c   :  { %v536_v22 = vadd.f32 %v535_v20, %v530_v19  ;;  %840 = vperm.xlu1 %1189, %v1420_v2  }
 0x19e   :  { %538 = vrot.lane.b32.xlu0 %v536_v22, %s1310_s24  ;;  %v1642_v23 = vpop.permute.xlu1 %543 }
 0x1a0   :  { %v343_v24 = vpop.permute.xlu0 %342  ;;  %1190 = vset.pattern.permute.xlu1 %v1363_v25 }
 0x1a1   :  { %345 = vst.msk [vmem:[#allocation5 + $0x50] sm:$0xff] %vm64_vm1, %v343_v24  ;;  %863 = vperm.xlu1 %1190, %v1420_v2  }
 0x1a2   :  { %548 = vperm.xlu0 %1155, %v1420_v2  }
 0x1a3   :  { %v556_v26 = vpop.permute.xlu1 %555 }
 0x1a4   :  { %v558_v32 = vmul.f32 %v1465_v44, %v556_v26  ;;  %v1373_v26 = vmov 97  }
 0x1a5   :  { %1192 = vset.pattern.permute.xlu1 %v1364_v27 }
 0x1a6   :  { %1159 = vset.pattern.permute.xlu0 %v1365_v29  ;;  %891 = vperm.xlu1 %1192, %v1647_v30  }
 0x1a8   :  { %v561_v31 = vpop.permute.xlu1 %560 }
 0x1a9   :  { %v563_v33 = vmul.f32 %v1472_v46, %v561_v31 }
 0x1aa   :  { %1193 = vset.pattern.permute.xlu1 %v1366_v34 }
 0x1ab   :  { %v564_v35 = vadd.f32 %v563_v33, %v558_v32  ;;  %896 = vperm.xlu1 %1193, %v1647_v30   ;;  %v462_v32 = vmul.f32 %v1465_v44, %v1612_v52 }
 0x1ad   :  { %566 = vrot.lane.b32.xlu0 %v564_v35, %s1310_s24  ;;  %v1654_v2 = vpop.permute.xlu1 %571 }
 0x1af   :  { %v371_v36 = vpop.permute.xlu0 %370  ;;  %1195 = vset.pattern.permute.xlu1 %v1367_v37 }
 0x1b0   :  { %373 = vst.msk [vmem:[#allocation5 + $0x58] sm:$0xff] %vm64_vm1, %v371_v36  ;;  %924 = vperm.xlu1 %1195, %v1647_v30  }
 0x1b1   :  { %576 = vperm.xlu0 %1159, %v1647_v30  }
 0x1b2   :  { %v584_v38 = vpop.permute.xlu1 %583 }
 0x1b3   :  { %v586_v42 = vmul.f32 %v1465_v44, %v584_v38 }
 0x1b4   :  { %1197 = vset.pattern.permute.xlu1 %v1370_v57 }
 0x1b5   :  { %1163 = vset.pattern.permute.xlu0 %v1368_v40 }
 0x1b7   :  { %v589_v41 = vpop.permute.xlu1 %588 }
 0x1b8   :  { %v591_v43 = vmul.f32 %v1472_v46, %v589_v41  ;;  %v1374_v41 = vmov 102  }
 0x1ba   :  { %v592_v45 = vadd.f32 %v591_v43, %v586_v42 }
 0x1bc   :  { %594 = vrot.lane.b32.xlu0 %v592_v45, %s1310_s24  ;;  %v1663_v47 = vpop.permute.xlu1 %599 }
 0x1c0   :  { %604 = vperm.xlu0 %1163, %v1647_v30   ;;  %v381_v48 = vpop.permute.xlu0 %380 }
 0x1c1   :  { %v383_v50 = vmul.f32 %v1472_v46, %v381_v48  ;;  %v612_v51 = vpop.permute.xlu1 %611  ;;  %v490_v48 = vmul.f32 %v1465_v44, %v1622_v63 }
 0x1c2   :  { %v614_v58 = vmul.f32 %v1465_v44, %v612_v51 }
 0x1c3   :  { %v384_v53 = vadd.f32 %v383_v50, %v378_v49  ;;  %v1375_v50 = vmov 107  }
 0x1c4   :  { %1167 = vset.pattern.permute.xlu0 %v1369_v54 }
 0x1c5   :  { %385 = vst.msk [vmem:[#allocation5 + $0x60] sm:$0xff] %vm47_vm0, %v384_v53  ;;  %v399_v55 = vpop.permute.xlu0 %398 }
 0x1c6   :  { %401 = vst.msk [vmem:[#allocation5 + $0x60] sm:$0xff] %vm64_vm1, %v399_v55  ;;  %v617_v56 = vpop.permute.xlu1 %616  ;;  %v1376_v55 = vmov 114  }
 0x1c7   :  { %v619_v59 = vmul.f32 %v1472_v46, %v617_v56  ;;  %v1727_v56 = vld [vmem:[%s1850_s1] ss:$0 sm:$0xff] }
 0x1c8   :  { %v518_v57 = vmul.f32 %v1727_v56, %v1632_v11  ;;  %v1381_v11 = vmov 100  }
 0x1c9   :  { %v620_v60 = vadd.f32 %v619_v59, %v614_v58  ;;  %v1734_v58 = vld [vmem:[%s1850_s1 + $0x1] ss:$0 sm:$0xff]  ;;  %s1392_s1 = smov [#allocation5]  }
 0x1ca   :  { %s940_s29 = sshll.u32 %s1392_s1, 4  ;;  %s941_s29 = int_to_ptr.vmem [resolvable:$true] %s940_s29 }
 0x1cb   :  { %622 = vrot.lane.b32.xlu0 %v620_v60, %s1310_s24  ;;  %v1674_v17 = vpop.permute.xlu1 %627  ;;  %v1379_v60 = vmov 126   ;;  %s1236_s30 = scalar_lea.vmem %s941_s29, 4096  ;;  %p1241_p9 = scmp.lt.s32.totalorder %s941_s29, %s941_s29 }
 0x1cc   :  { %p1237_p8 = scmp.ne.s32.totalorder %s941_s29, %s1236_s30  ;;  %p1242_p10 = scmp.lt.s32.totalorder %s1236_s30, %s1236_s30 }
 0x1ce   :  { %p1243_p11 = por %p1242_p10, %p1241_p9 }
 0x1cf   :  { %632 = vperm.xlu0 %1167, %v1647_v30  }
 0x1d0   :  { %v640_v61 = vpop.permute.xlu1 %639  ;;  %p1244_p12 = pnand %p1243_p11, %p1237_p8 }
 0x1d1   :  { %v642_v1 = vmul.f32 %v1465_v44, %v640_v61  ;;  %v1380_v61 = vmov 108  }
 0x1d3   :  { %1171 = vset.pattern.permute.xlu0 %v1371_v62 }
 0x1d5   :  { %v645_v0 = vpop.permute.xlu1 %644 }
 0x1d6   :  { %v647_v3 = vmul.f32 %v1472_v46, %v645_v0  ;;  %v409_v4 = vpop.permute.xlu0 %408 }
 0x1d7   :  { %v411_v6 = vmul.f32 %v1472_v46, %v409_v4  ;;  %v1384_v4 = vmov 113  }
 0x1d8   :  { %v648_v7 = vadd.f32 %v647_v3, %v642_v1  ;;  %v1382_v1 = vmov 109   ;;  %v1383_v3 = vmov 105  }
 0x1d9   :  { %v412_v8 = vadd.f32 %v411_v6, %v406_v5  ;;  %v546_v6 = vmul.f32 %v1727_v56, %v1642_v23  ;;  %v1389_v23 = vmov 121  }
 0x1da   :  { %650 = vrot.lane.b32.xlu0 %v648_v7, %s1310_s24  ;;  %v1683_v9 = vpop.permute.xlu1 %655  ;;  %v427_v10 = vpop.permute.xlu0 %426 }
 0x1db   :  { %413 = vst.msk [vmem:[#allocation5 + $0x68] sm:$0xff] %vm47_vm0, %v412_v8  ;;  %v1385_v8 = vmov 116  }
 0x1dc   :  { %429 = vst.msk [vmem:[#allocation5 + $0x68] sm:$0xff] %vm64_vm1, %v427_v10  ;;  %v1386_v10 = vmov 112  }
 0x1de   :  { %660 = vperm.xlu0 %1171, %v1647_v30  }
 0x1df   :  { %v668_v12 = vpop.permute.xlu1 %667 }
 0x1e0   :  { %v670_v28 = vmul.f32 %v1465_v44, %v668_v12 }
 0x1e2   :  { %1175 = vset.pattern.permute.xlu0 %v1372_v13 }
 0x1e4   :  { %v673_v14 = vpop.permute.xlu1 %672 }
 0x1e5   :  { %v675_v15 = vmul.f32 %v1472_v46, %v673_v14  ;;  %v437_v16 = vpop.permute.xlu0 %436  ;;  %v1387_v14 = vmov 120  }
 0x1e6   :  { %v439_v19 = vmul.f32 %v1472_v46, %v437_v16 }
 0x1e7   :  { %v676_v20 = vadd.f32 %v675_v15, %v670_v28  ;;  %v1388_v28 = vmov 117   ;;  %v1390_v15 = vmov 124  }
 0x1e8   :  { %v440_v21 = vadd.f32 %v439_v19, %v434_v18  ;;  %v574_v18 = vmul.f32 %v1727_v56, %v1654_v2 }
 0x1e9   :  { %678 = vrot.lane.b32.xlu0 %v676_v20, %s1310_s24  ;;  %v1694_v22 = vpop.permute.xlu1 %683  ;;  %v455_v24 = vpop.permute.xlu0 %454  ;;  %v1391_v20 = vmov 125  }
 0x1ea   :  { %441 = vst.msk [vmem:[#allocation5 + $0x70] sm:$0xff] %vm47_vm0, %v440_v21 }
 0x1eb   :  { %457 = vst.msk [vmem:[#allocation5 + $0x70] sm:$0xff] %vm64_vm1, %v455_v24 }
 0x1ed   :  { %688 = vperm.xlu0 %1175, %v1647_v30  }
 0x1ee   :  { %v696_v25 = vpop.permute.xlu1 %695 }
 0x1ef   :  { %v698_v39 = vmul.f32 %v1465_v44, %v696_v25 }
 0x1f1   :  { %1179 = vset.pattern.permute.xlu0 %v1373_v26  ;;  %v602_v26 = vmul.f32 %v1727_v56, %v1663_v47 }
 0x1f3   :  { %v701_v27 = vpop.permute.xlu1 %700 }
 0x1f4   :  { %v703_v29 = vmul.f32 %v1472_v46, %v701_v27  ;;  %v465_v31 = vpop.permute.xlu0 %464 }
 0x1f5   :  { %v467_v33 = vmul.f32 %v1472_v46, %v465_v31 }
 0x1f6   :  { %v704_v34 = vadd.f32 %v703_v29, %v698_v39 }
 0x1f7   :  { %v468_v35 = vadd.f32 %v467_v33, %v462_v32 }
 0x1f8   :  { %706 = vrot.lane.b32.xlu0 %v704_v34, %s1310_s24  ;;  %v483_v36 = vpop.permute.xlu0 %482  ;;  %v1705_v38 = vpop.permute.xlu1 %711 }
 0x1f9   :  { %469 = vst.msk [vmem:[#allocation5 + $0x78] sm:$0xff] %vm47_vm0, %v468_v35 }
 0x1fa   :  { %485 = vst.msk [vmem:[#allocation5 + $0x78] sm:$0xff] %vm64_vm1, %v483_v36  ;;  %v658_v36 = vmul.f32 %v1727_v56, %v1683_v9 }
 0x1fc   :  { %716 = vperm.xlu0 %1179, %v1647_v30  }
 0x1fd   :  { %v724_v40 = vpop.permute.xlu1 %723 }
 0x1fe   :  { %v726_v52 = vmul.f32 %v1465_v44, %v724_v40  ;;  %v1377_v44 = vmov 119  }
 0x200   :  { %1182 = vset.pattern.permute.xlu0 %v1374_v41 }
 0x201   :  { %751 = vperm.xlu0 %1182, %v1647_v30  }
 0x202   :  { %v729_v42 = vpop.permute.xlu1 %728 }
 0x203   :  { %v493_v43 = vpop.permute.xlu0 %492  ;;  %v731_v45 = vmul.f32 %v1472_v46, %v729_v42 }
 0x204   :  { %v495_v49 = vmul.f32 %v1472_v46, %v493_v43  ;;  %v1378_v46 = vmov 104  }
 0x205   :  { %1185 = vset.pattern.permute.xlu0 %v1375_v50  ;;  %v732_v51 = vadd.f32 %v731_v45, %v726_v52 }
 0x206   :  { %v496_v53 = vadd.f32 %v495_v49, %v490_v48  ;;  %784 = vperm.xlu0 %1185, %v1647_v30   ;;  %v686_v48 = vmul.f32 %v1727_v56, %v1694_v22 }
 0x207   :  { %v511_v54 = vpop.permute.xlu0 %510  ;;  %734 = vrot.lane.b32.xlu1 %v732_v51, %s1310_s24  ;;  %v757_v29 = vpop.permute.xlu1 %756 }
 0x208   :  { %497 = vst.msk [vmem:[#allocation5 + $0x80] sm:$0xff] %vm47_vm0, %v496_v53 }
 0x209   :  { %513 = vst.msk [vmem:[#allocation5 + $0x80] sm:$0xff] %vm64_vm1, %v511_v54 }
 0x20a   :  { %1188 = vset.pattern.permute.xlu0 %v1376_v55 }
 0x20b   :  { %835 = vperm.xlu0 %1188, %v1647_v30   ;;  %744 = vperm.xlu1 %1197, %v1647_v30  }
 0x20c   :  { %v780_v47 = vpop.permute.xlu1 %779 }
 0x20f   :  { %1191 = vset.pattern.permute.xlu0 %v1377_v44  ;;  %1198 = vset.pattern.permute.xlu1 %v1378_v46  ;;  %v714_v44 = vmul.f32 %v1727_v56, %v1705_v38 }
 0x210   :  { %868 = vperm.xlu0 %1191, %v1647_v30   ;;  %767 = vperm.xlu1 %1198, %v1647_v30  }
 0x211   :  { %v808_v34 = vpop.permute.xlu1 %807 }
 0x212   :  { %v521_v63 = vpop.permute.xlu0 %520 }
 0x213   :  { %v523_v59 = vmul.f32 %v1734_v58, %v521_v63 }
 0x214   :  { %1194 = vset.pattern.permute.xlu0 %v1379_v60  ;;  %1200 = vset.pattern.permute.xlu1 %v1380_v61  ;;  %v810_v61 = vmul.f32 %v1727_v56, %v808_v34 }
 0x215   :  { %v524_v62 = vadd.f32 %v523_v59, %v518_v57  ;;  %919 = vperm.xlu0 %1194, %v1647_v30   ;;  %795 = vperm.xlu1 %1200, %v1647_v30   ;;  %v759_v59 = vmul.f32 %v1734_v58, %v757_v29 }
 0x216   :  { %v539_v0 = vpop.permute.xlu0 %538  ;;  %v813_v52 = vpop.permute.xlu1 %812 }
 0x217   :  { %525 = vst.msk [vmem:[#allocation5 + $0x88] sm:$0xff] %vm47_vm0, %v524_v62  ;;  %v815_v62 = vmul.f32 %v1734_v58, %v813_v52 }
 0x218   :  { %541 = vst.msk [vmem:[#allocation5 + $0x88] sm:$0xff] %vm64_vm1, %v539_v0 }
 0x219   :  { %1196 = vset.pattern.permute.xlu0 %v1381_v11  ;;  %1201 = vset.pattern.permute.xlu1 %v1382_v1  ;;  %v782_v11 = vmul.f32 %v1727_v56, %v780_v47 }
 0x21a   :  { %739 = vperm.xlu0 %1196, %v1647_v30   ;;  %800 = vperm.xlu1 %1201, %v1647_v30  }
 0x21e   :  { %1199 = vset.pattern.permute.xlu0 %v1383_v3  ;;  %1203 = vset.pattern.permute.xlu1 %v1384_v4  ;;  %v816_v3 = vadd.f32 %v815_v62, %v810_v61 }
 0x21f   :  { %772 = vperm.xlu0 %1199, %v1647_v30   ;;  %828 = vperm.xlu1 %1203, %v1647_v30  }
 0x221   :  { %v549_v5 = vpop.permute.xlu0 %548 }
 0x222   :  { %v551_v7 = vmul.f32 %v1734_v58, %v549_v5 }
 0x223   :  { %1204 = vset.pattern.permute.xlu1 %v1385_v8  ;;  %1202 = vset.pattern.permute.xlu0 %v1386_v10 }
 0x224   :  { %v552_v12 = vadd.f32 %v551_v7, %v546_v6  ;;  %851 = vperm.xlu1 %1204, %v1647_v30   ;;  %823 = vperm.xlu0 %1202, %v1647_v30  }
 0x225   :  { %v567_v13 = vpop.permute.xlu0 %566 }
 0x226   :  { %553 = vst.msk [vmem:[#allocation5 + $0x90] sm:$0xff] %vm47_vm0, %v552_v12 }
 0x227   :  { %569 = vst.msk [vmem:[#allocation5 + $0x90] sm:$0xff] %vm64_vm1, %v567_v13 }
 0x228   :  { %1206 = vset.pattern.permute.xlu1 %v1387_v14  ;;  %1205 = vset.pattern.permute.xlu0 %v1388_v28 }
 0x229   :  { %879 = vperm.xlu1 %1206, %v1647_v30   ;;  %856 = vperm.xlu0 %1205, %v1647_v30  }
 0x22d   :  { %1207 = vset.pattern.permute.xlu1 %v1389_v23  ;;  %1208 = vset.pattern.permute.xlu0 %v1390_v15 }
 0x22e   :  { %884 = vperm.xlu1 %1207, %v1647_v30   ;;  %907 = vperm.xlu0 %1208, %v1647_v30  }
 0x230   :  { %v577_v16 = vpop.permute.xlu0 %576 }
 0x231   :  { %v579_v19 = vmul.f32 %v1734_v58, %v577_v16 }
 0x232   :  { %1209 = vset.pattern.permute.xlu1 %v1391_v20  ;;  %1210 = vset.pattern.permute.xlu0 %v1367_v37 }
 0x233   :  { %v580_v21 = vadd.f32 %v579_v19, %v574_v18  ;;  %912 = vperm.xlu1 %1209, %v1647_v30   ;;  %v630_v30 = vmul.f32 %v1727_v56, %v1674_v17  ;;  %v841_v17 = vpop.permute.xlu1 %840 }
 0x234   :  { %v595_v24 = vpop.permute.xlu0 %594  ;;  %v843_v7 = vmul.f32 %v1734_v58, %v841_v17 }
 0x235   :  { %581 = vst.msk [vmem:[#allocation5 + $0x98] sm:$0xff] %vm47_vm0, %v580_v21 }
 0x236   :  { %597 = vst.msk [vmem:[#allocation5 + $0x98] sm:$0xff] %vm64_vm1, %v595_v24 }
 0x237   :  { %v864_v43 = vpop.permute.xlu1 %863 }
 0x238   :  { %v866_v23 = vmul.f32 %v1727_v56, %v864_v43 }
 0x23b   :  { %v892_v9 = vpop.permute.xlu1 %891 }
 0x23c   :  { %v894_v10 = vmul.f32 %v1727_v56, %v892_v9 }
 0x23f   :  { %v605_v25 = vpop.permute.xlu0 %604  ;;  %v897_v53 = vpop.permute.xlu1 %896 }
 0x240   :  { %v607_v2 = vmul.f32 %v1734_v58, %v605_v25  ;;  %v899_v12 = vmul.f32 %v1734_v58, %v897_v53 }
 0x242   :  { %v608_v27 = vadd.f32 %v607_v2, %v602_v26  ;;  %v900_v16 = vadd.f32 %v899_v12, %v894_v10 }
 0x243   :  { %v623_v39 = vpop.permute.xlu0 %622  ;;  %v925_v54 = vpop.permute.xlu1 %924 }
 0x244   :  { %609 = vst.msk [vmem:[#allocation5 + $0xa0] sm:$0xff] %vm47_vm0, %v608_v27  ;;  %v927_v19 = vmul.f32 %v1734_v58, %v925_v54 }
 0x245   :  { %625 = vst.msk [vmem:[#allocation5 + $0xa0] sm:$0xff] %vm64_vm1, %v623_v39 }
 0x24e   :  { %v633_v37 = vpop.permute.xlu0 %632 }
 0x24f   :  { %v635_v31 = vmul.f32 %v1734_v58, %v633_v37 }
 0x251   :  { %v636_v32 = vadd.f32 %v635_v31, %v630_v30 }
 0x252   :  { %v651_v33 = vpop.permute.xlu0 %650 }
 0x253   :  { %637 = vst.msk [vmem:[#allocation5 + $0xa8] sm:$0xff] %vm47_vm0, %v636_v32 }
 0x254   :  { %653 = vst.msk [vmem:[#allocation5 + $0xa8] sm:$0xff] %vm64_vm1, %v651_v33 }
 0x25d   :  { %v661_v35 = vpop.permute.xlu0 %660 }
 0x25e   :  { %v663_v40 = vmul.f32 %v1734_v58, %v661_v35 }
 0x260   :  { %v664_v41 = vadd.f32 %v663_v40, %v658_v36 }
 0x261   :  { %v679_v42 = vpop.permute.xlu0 %678 }
 0x262   :  { %665 = vst.msk [vmem:[#allocation5 + $0xb0] sm:$0xff] %vm47_vm0, %v664_v41 }
 0x263   :  { %681 = vst.msk [vmem:[#allocation5 + $0xb0] sm:$0xff] %vm64_vm1, %v679_v42 }
 0x26c   :  { %v689_v45 = vpop.permute.xlu0 %688 }
 0x26d   :  { %v691_v49 = vmul.f32 %v1734_v58, %v689_v45 }
 0x26f   :  { %v692_v50 = vadd.f32 %v691_v49, %v686_v48 }
 0x270   :  { %v707_v51 = vpop.permute.xlu0 %706 }
 0x271   :  { %693 = vst.msk [vmem:[#allocation5 + $0xb8] sm:$0xff] %vm47_vm0, %v692_v50 }
 0x272   :  { %709 = vst.msk [vmem:[#allocation5 + $0xb8] sm:$0xff] %vm64_vm1, %v707_v51 }
 0x279   :  { %v735_v57 = vpop.permute.xlu1 %734 }
 0x27b   :  { %v717_v55 = vpop.permute.xlu0 %716 }
 0x27c   :  { %v719_v46 = vmul.f32 %v1734_v58, %v717_v55 }
 0x27e   :  { %v720_v63 = vadd.f32 %v719_v46, %v714_v44 }
 0x280   :  { %721 = vst.msk [vmem:[#allocation5 + $0xc0] sm:$0xff] %vm47_vm0, %v720_v63  ;;  %v752_v22 = vpop.permute.xlu0 %751 }
 0x281   :  { %v754_v60 = vmul.f32 %v1727_v56, %v752_v22  ;;  %737 = vst.msk [vmem:[#allocation5 + $0xc0] sm:$0xff] %vm64_vm1, %v735_v57 }
 0x283   :  { %v760_v0 = vadd.f32 %v759_v59, %v754_v60 }
 0x285   :  { %762 = vrot.lane.b32.xlu1 %v760_v0, %s1310_s24  ;;  %v785_v38 = vpop.permute.xlu0 %784 }
 0x286   :  { %v787_v1 = vmul.f32 %v1734_v58, %v785_v38 }
 0x288   :  { %v788_v4 = vadd.f32 %v787_v1, %v782_v11 }
 0x289   :  { %818 = vrot.lane.b32.xlu1 %v816_v3, %s1310_s24 }
 0x28a   :  { %790 = vrot.lane.b32.xlu0 %v788_v4, %s1310_s24  ;;  %v836_v5 = vpop.permute.xlu0 %835  ;;  %v745_v6 = vpop.permute.xlu1 %744 }
 0x28b   :  { %v838_v8 = vmul.f32 %v1727_v56, %v836_v5  ;;  %v747_v26 = vmul.f32 %v1734_v58, %v745_v6 }
 0x28d   :  { %v844_v13 = vadd.f32 %v843_v7, %v838_v8 }
 0x28f   :  { %846 = vrot.lane.b32.xlu0 %v844_v13, %s1310_s24  ;;  %v869_v14 = vpop.permute.xlu0 %868  ;;  %v768_v28 = vpop.permute.xlu1 %767 }
 0x290   :  { %v871_v15 = vmul.f32 %v1734_v58, %v869_v14  ;;  %v770_v32 = vmul.f32 %v1727_v56, %v768_v28 }
 0x292   :  { %v872_v18 = vadd.f32 %v871_v15, %v866_v23 }
 0x293   :  { %902 = vrot.lane.b32.xlu0 %v900_v16, %s1310_s24 }
 0x294   :  { %874 = vrot.lane.b32.xlu1 %v872_v18, %s1310_s24  ;;  %v920_v20 = vpop.permute.xlu0 %919  ;;  %v796_v21 = vpop.permute.xlu1 %795 }
 0x295   :  { %v922_v24 = vmul.f32 %v1727_v56, %v920_v20  ;;  %v798_v2 = vmul.f32 %v1727_v56, %v796_v21 }
 0x297   :  { %v928_v25 = vadd.f32 %v927_v19, %v922_v24 }
 0x299   :  { %930 = vrot.lane.b32.xlu1 %v928_v25, %s1310_s24  ;;  %v740_v27 = vpop.permute.xlu0 %739  ;;  %v801_v39 = vpop.permute.xlu1 %800 }
 0x29a   :  { %v742_v37 = vmul.f32 %v1727_v56, %v740_v27  ;;  %v803_v29 = vmul.f32 %v1734_v58, %v801_v39 }
 0x29c   :  { %v748_v30 = vadd.f32 %v747_v26, %v742_v37  ;;  %v804_v31 = vadd.f32 %v803_v29, %v798_v2 }
 0x29e   :  { %749 = vst.msk [vmem:[#allocation5 + $0xc8] sm:$0xff] %vm47_vm0, %v748_v30  ;;  %v773_v33 = vpop.permute.xlu0 %772  ;;  %805 = vst.msk [vmem:[#allocation5 + $0xd8] sm:$0xff] %vm47_vm0, %v804_v31  ;;  %v829_v47 = vpop.permute.xlu1 %828 }
 0x29f   :  { %v775_v34 = vmul.f32 %v1734_v58, %v773_v33  ;;  %v831_v36 = vmul.f32 %v1734_v58, %v829_v47 }
 0x2a1   :  { %v776_v35 = vadd.f32 %v775_v34, %v770_v32 }
 0x2a3   :  { %777 = vst.msk [vmem:[#allocation5 + $0xd0] sm:$0xff] %vm47_vm0, %v776_v35  ;;  %v852_v40 = vpop.permute.xlu1 %851  ;;  %v824_v41 = vpop.permute.xlu0 %823 }
 0x2a4   :  { %v826_v52 = vmul.f32 %v1727_v56, %v824_v41  ;;  %v854_v17 = vmul.f32 %v1727_v56, %v852_v40 }
 0x2a6   :  { %v832_v42 = vadd.f32 %v831_v36, %v826_v52 }
 0x2a8   :  { %833 = vst.msk [vmem:[#allocation5 + $0xe0] sm:$0xff] %vm47_vm0, %v832_v42  ;;  %v880_v43 = vpop.permute.xlu1 %879  ;;  %v857_v45 = vpop.permute.xlu0 %856 }
 0x2a9   :  { %v859_v48 = vmul.f32 %v1734_v58, %v857_v45  ;;  %v882_v50 = vmul.f32 %v1727_v56, %v880_v43 }
 0x2ab   :  { %v860_v49 = vadd.f32 %v859_v48, %v854_v17 }
 0x2ad   :  { %861 = vst.msk [vmem:[#allocation5 + $0xe8] sm:$0xff] %vm47_vm0, %v860_v49  ;;  %v885_v51 = vpop.permute.xlu1 %884  ;;  %v908_v54 = vpop.permute.xlu0 %907 }
 0x2ae   :  { %v887_v9 = vmul.f32 %v1734_v58, %v885_v51  ;;  %v910_v55 = vmul.f32 %v1727_v56, %v908_v54 }
 0x2b0   :  { %v888_v53 = vadd.f32 %v887_v9, %v882_v50 }
 0x2b2   :  { %889 = vst.msk [vmem:[#allocation5 + $0xf0] sm:$0xff] %vm47_vm0, %v888_v53  ;;  %v913_v44 = vpop.permute.xlu1 %912 }
 0x2b3   :  { %v915_v46 = vmul.f32 %v1734_v58, %v913_v44 }
 0x2b5   :  { %v916_v63 = vadd.f32 %v915_v46, %v910_v55 }
 0x2b7   :  { %917 = vst.msk [vmem:[#allocation5 + $0xf8] sm:$0xff] %vm47_vm0, %v916_v63 }
 0x2f7   :  { %v763_v57 = vpop.permute.xlu1 %762 }
 0x2f8   :  { %765 = vst.msk [vmem:[#allocation5 + $0xc8] sm:$0xff] %vm64_vm1, %v763_v57 }
 0x2fb   :  { %v819_v22 = vpop.permute.xlu1 %818 }
 0x2fc   :  { %821 = vst.msk [vmem:[#allocation5 + $0xd8] sm:$0xff] %vm64_vm1, %v819_v22  ;;  %v791_v59 = vpop.permute.xlu0 %790 }
 0x2fd   :  { %793 = vst.msk [vmem:[#allocation5 + $0xd0] sm:$0xff] %vm64_vm1, %v791_v59 }
 0x301   :  { %v847_v60 = vpop.permute.xlu0 %846 }
 0x302   :  { %849 = vst.msk [vmem:[#allocation5 + $0xe0] sm:$0xff] %vm64_vm1, %v847_v60 }
 0x305   :  { %v903_v56 = vpop.permute.xlu0 %902 }
 0x306   :  { %905 = vst.msk [vmem:[#allocation5 + $0xf0] sm:$0xff] %vm64_vm1, %v903_v56  ;;  %v875_v61 = vpop.permute.xlu1 %874 }
 0x307   :  { %877 = vst.msk [vmem:[#allocation5 + $0xe8] sm:$0xff] %vm64_vm1, %v875_v61 }
 0x30b   :  { %v931_v58 = vpop.permute.xlu1 %930 }
 0x30c   :  { %933 = vst.msk [vmem:[#allocation5 + $0xf8] sm:$0xff] %vm64_vm1, %v931_v58 }
 0x30d   :  { %1247 = shalt.err (!%p1244_p12)
}
 0x30e   :  { %s1248_s5 = scalar_lea.hbm %s1851_s2, 4096 }
 0x30f   :  { %p1249_p13 = scmp.ne.s32.totalorder %s1851_s2, %s1248_s5  ;;  %p1252_p0 = scmp.lt.u32.totalorder %s1248_s5, %s1851_s2 }
 0x311   :  { %p1254_p1 = pnand %p1252_p0, %p1249_p13 }
 0x313   :  { %1257 = shalt.err (!%p1254_p1)
}
 0x314   :  { %943 = dma.vmem_to_hbm [thread:$0]  %s941_s29, 4096, %s1851_s2, [#allocation4]  }
 0x315   :  { %1260 = dma.done.wait [#allocation4], 4096  }
 0x316   :  { %1261 = vsyncadd [#allocation4], 4294963200 }
 0x317   :  { %947 = vsyncpa [#allocation3], 1 }
 0x318   :  { %948 = vsyncpa [#allocation4], 1 }

</bundles_post_ra>
